<compile_context>
chip_gen: v7x
topology: tpu7x:2x2x1
jax: 0.10.0
libtpu: 0.0.40
codegen_flags: <defaults>
</compile_context>

<pallas_src>
import jax
import jax.numpy as jnp
from jax.experimental import pallas as pl
from jax.experimental.pallas import tpu as pltpu

IN_DIM = 32
H1 = 128
H2 = 512
OUT_DIM = 32 * 32  # 1024


def fnet_kernel(x_ref, w1_ref, b1_ref, w2_ref, b2_ref, w3_ref, b3_ref, g_ref,
                o_ref):
    x = x_ref[...]                                   # (TB, 32) f32
    xb = x.astype(jnp.bfloat16)

    # Linear(32,128) [+ folded BN] -> ReLU
    h1 = jnp.dot(xb, w1_ref[...], preferred_element_type=jnp.float32) + b1_ref[...]
    h1 = jnp.maximum(h1, 0.0)                        # (TB, 128) f32

    # Linear(128,512) [+ folded BN] -> ReLU
    h2 = jnp.dot(h1.astype(jnp.bfloat16), w2_ref[...],
                 preferred_element_type=jnp.float32) + b2_ref[...]
    h2 = jnp.maximum(h2, 0.0)                        # (TB, 512) f32

    # Linear(512,1024), columns pre-permuted to j-major: t[b, 32*j+k]
    t = jnp.dot(h2.astype(jnp.bfloat16), w3_ref[...],
                preferred_element_type=jnp.float32) + b3_ref[...]   # (TB, 1024)

    # bmm(x.unsqueeze(1), t.view(B,32,32)).squeeze(1):
    #   y[b, j] = sum_k x[b, k] * t[b, 32*j + k]   (j-major t)
    # x_tiled[b, 32*j+k] = x[b, k]; grouped 32-lane sum via a bf16 MXU matmul
    # with the constant 0/1 matrix G[c, j] = (c // 32 == j).
    # TODO(synk): at tb>=1024, chunk this stage over 256-column slabs of
    # w3/b3/G to cut live f32 intermediates (mainly for v7x's 64 MiB VMEM).
    x_tiled = jnp.tile(x, (1, 32))                   # (TB, 1024) f32
    p = (x_tiled * t).astype(jnp.bfloat16)           # (TB, 1024) bf16
    o_ref[...] = jnp.dot(p, g_ref[...], preferred_element_type=jnp.float32)


def fnet_forward(x, kp, *, tb=None):
    """x: (B, 32) f32.  kp: folded kernel params (see fold_params)."""
    B = x.shape[0]
    if tb is None:
        # Largest batch tile <= 512 that divides B and is a sublane multiple,
        # while leaving >= 2 grid steps so the "parallel" batch axis can shard
        # across both TensorCores on v7x.
        cap = min(B // 2 if B >= 16 else B, 512)
        tb = B
        for cand in range(8, cap + 1, 8):
            if B % cand == 0:
                tb = cand
    assert B % tb == 0 and tb % 8 == 0, "batch tile must be a sublane multiple"
    grid = (B // tb,)

    def resident(arr):
        # Whole array resident in VMEM; constant block index -> DMA'd once.
        # TODO(synk): pipeline_mode=pl.Buffered(1) would skip the pointless
        # double-buffering of ~1.3 MiB of weights; enable once verified on the
        # deployed JAX version.
        return pl.BlockSpec(arr.shape, lambda i: (0,) * arr.ndim)

    operands = (x, kp["w1"], kp["b1"], kp["w2"], kp["b2"],
                kp["w3"], kp["b3"], kp["g"])

    flops = 2 * B * (IN_DIM * H1 + H1 * H2 + H2 * OUT_DIM + OUT_DIM * IN_DIM)
    bytes_accessed = sum(int(v.size) * v.dtype.itemsize for v in operands[1:])
    bytes_accessed += B * IN_DIM * 4 * 2  # x in + y out

    return pl.pallas_call(
        fnet_kernel,
        out_shape=jax.ShapeDtypeStruct((B, IN_DIM), jnp.float32),
        grid=grid,
        in_specs=[pl.BlockSpec((tb, IN_DIM), lambda i: (i, 0))]
                 + [resident(o) for o in operands[1:]],
        # TODO(synk): a lane-dense (B//4, 128) output view would turn the
        # 32-wide masked stores into full-width vst, but the required in-kernel
        # (tb,32)->(tb//4,128) relayout is a lowering risk and the kernel is
        # MXU-bound, so it is left as-is.
        out_specs=pl.BlockSpec((tb, IN_DIM), lambda i: (i, 0)),
        compiler_params=pltpu.CompilerParams(
            dimension_semantics=("parallel",),          # megacore on v7x
            vmem_limit_bytes=48 * 1024 * 1024),
        cost_estimate=pl.CostEstimate(flops=int(flops), transcendentals=0,
                                      bytes_accessed=int(bytes_accessed)),
    )(*operands)


def init_raw_params(key):
    """Deterministic synthetic parameters (PyTorch __init__ shapes), f32.
    BatchNorm1d is represented (eval mode) by scale s = gamma/sqrt(var+eps)
    and shift t = beta - mean*s."""
    ks = jax.random.split(key, 16)
    eps = 1e-5

    def lin(kw, kb, fan_in, fan_out):
        bound = 1.0 / (fan_in ** 0.5)
        w = jax.random.uniform(kw, (fan_in, fan_out), jnp.float32, -bound, bound)
        b = jax.random.uniform(kb, (1, fan_out), jnp.float32, -bound, bound)
        return w, b

    def bn(kg, kb, km, kv, c):
        gamma = 1.0 + 0.1 * jax.random.normal(kg, (1, c), jnp.float32)
        beta = 0.1 * jax.random.normal(kb, (1, c), jnp.float32)
        mean = 0.1 * jax.random.normal(km, (1, c), jnp.float32)
        var = 0.5 + jnp.abs(jax.random.normal(kv, (1, c), jnp.float32))
        scale = gamma / jnp.sqrt(var + eps)
        shift = beta - mean * scale
        return scale, shift

    w1, b1 = lin(ks[0], ks[1], IN_DIM, H1)
    s1, t1 = bn(ks[2], ks[3], ks[4], ks[5], H1)
    w2, b2 = lin(ks[6], ks[7], H1, H2)
    s2, t2 = bn(ks[8], ks[9], ks[10], ks[11], H2)
    w3, b3 = lin(ks[12], ks[13], H2, OUT_DIM)

    return dict(w1=w1, b1=b1, s1=s1, t1=t1,
                w2=w2, b2=b2, s2=s2, t2=t2,
                w3=w3, b3=b3)


def fold_params(rp):
    """Fold BN into the Linears, permute w3/b3 to j-major, cast weights to
    bf16, and build the constant bf16 group-sum matrix for the bmm reduce."""
    w1 = (rp["w1"] * rp["s1"]).astype(jnp.bfloat16)          # (32, 128)
    b1 = rp["b1"] * rp["s1"] + rp["t1"]                      # (1, 128) f32
    w2 = (rp["w2"] * rp["s2"]).astype(jnp.bfloat16)          # (128, 512)
    b2 = rp["b2"] * rp["s2"] + rp["t2"]                      # (1, 512) f32
    # Column permutation: new column 32*j+k <- old column 32*k+j.
    w3 = (rp["w3"].reshape(H2, 32, 32).transpose(0, 2, 1)
          .reshape(H2, OUT_DIM).astype(jnp.bfloat16))        # (512, 1024)
    b3 = (rp["b3"].reshape(1, 32, 32).transpose(0, 2, 1)
          .reshape(1, OUT_DIM))                              # (1, 1024) f32
    # G[c, j] = 1 iff c // 32 == j  (grouped-32 lane reduce as a matmul).
    # Stored bf16 (0/1 exact) so the reduce matmul runs at bf16 MXU rate.
    g = (jax.lax.broadcasted_iota(jnp.int32, (OUT_DIM, IN_DIM), 0) // 32
         == jax.lax.broadcasted_iota(jnp.int32, (OUT_DIM, IN_DIM), 1)
         ).astype(jnp.bfloat16)
    return dict(w1=w1, b1=b1, w2=w2, b2=b2, w3=w3, b3=b3, g=g)


def fnet_reference_f32(x, rp):
    """Pure-JAX f32 reference mirroring the PyTorch forward (eval-mode BN)."""
    h1 = jnp.maximum((x @ rp["w1"] + rp["b1"]) * rp["s1"] + rp["t1"], 0.0)
    h2 = jnp.maximum((h1 @ rp["w2"] + rp["b2"]) * rp["s2"] + rp["t2"], 0.0)
    t = h2 @ rp["w3"] + rp["b3"]
    t3 = t.reshape(-1, IN_DIM, IN_DIM)
    return jnp.einsum("bk,bkj->bj", x, t3)


def fnet_reference_matched(x, kp):
    """Pure-JAX reference using the same folded bf16 params / same math as the
    kernel (isolates kernel bugs from the intentional bf16 quantization)."""
    xb = x.astype(jnp.bfloat16)
    h1 = jnp.maximum(jnp.dot(xb, kp["w1"],
                             preferred_element_type=jnp.float32) + kp["b1"], 0.0)
    h2 = jnp.maximum(jnp.dot(h1.astype(jnp.bfloat16), kp["w2"],
                             preferred_element_type=jnp.float32) + kp["b2"], 0.0)
    t = jnp.dot(h2.astype(jnp.bfloat16), kp["w3"],
                preferred_element_type=jnp.float32) + kp["b3"]
    p = (jnp.tile(x, (1, 32)) * t).astype(jnp.bfloat16)
    return jnp.dot(p, kp["g"], preferred_element_type=jnp.float32)


if __name__ == "__main__":
    key = jax.random.PRNGKey(0)
    kx, kparam = jax.random.split(key)

    B = 128   # small test batch; default tb picks 64 -> grid=(2,) (pipelined,
              # and both v7x TensorCores exercised)
    x = jax.random.normal(kx, (B, IN_DIM), jnp.float32)

    # TODO(synk): PyTorch BatchNorm1d in training mode uses batch statistics;
    # this kernel reproduces eval-mode BN (running stats folded into weights).
    raw_params = init_raw_params(kparam)
    kernel_params = fold_params(raw_params)

    out = jax.block_until_ready(fnet_forward(x, kernel_params))
    assert out.shape == (B, IN_DIM)

    ref_matched = fnet_reference_matched(x, kernel_params)
    ref_f32 = fnet_reference_f32(x, raw_params)
    assert jnp.allclose(out, ref_matched, atol=1e-2, rtol=1e-2), \
        "mismatch vs bf16-matched reference"
    assert jnp.allclose(out, ref_f32, atol=1e-1, rtol=1e-1), \
        "mismatch vs f32 PyTorch-faithful reference"

    print("KERNEL_OK")
</pallas_src>

<mosaic_0001>
module attributes {stable_mosaic.version = 11 : i64} {
  func.func @fnet_kernel(%arg0: i32, %arg1: memref<64x32xf32, #tpu.memory_space<vmem>>, %arg2: memref<32x128xbf16, #tpu.memory_space<vmem>>, %arg3: memref<1x128xf32, #tpu.memory_space<vmem>>, %arg4: memref<128x512xbf16, #tpu.memory_space<vmem>>, %arg5: memref<1x512xf32, #tpu.memory_space<vmem>>, %arg6: memref<512x1024xbf16, #tpu.memory_space<vmem>>, %arg7: memref<1x1024xf32, #tpu.memory_space<vmem>>, %arg8: memref<1024x32xbf16, #tpu.memory_space<vmem>>, %arg9: memref<64x32xf32, #tpu.memory_space<vmem>>) attributes {dimension_semantics = [#tpu.dimension_semantics<parallel>], iteration_bounds = array<i64: 2>, scalar_prefetch = 0 : i64, scratch_operands = 0 : i64, tpu.core_type = #tpu.core_type<tc>, window_params = [{transform_indices = @transform_0, window_bounds = array<i64: 64, 32>}, {pipeline_mode = #tpu.pipeline_mode<synchronous>, transform_indices = @transform_1, window_bounds = array<i64: 32, 128>}, {pipeline_mode = #tpu.pipeline_mode<synchronous>, transform_indices = @transform_2, window_bounds = array<i64: 1, 128>}, {pipeline_mode = #tpu.pipeline_mode<synchronous>, transform_indices = @transform_3, window_bounds = array<i64: 128, 512>}, {pipeline_mode = #tpu.pipeline_mode<synchronous>, transform_indices = @transform_4, window_bounds = array<i64: 1, 512>}, {pipeline_mode = #tpu.pipeline_mode<synchronous>, transform_indices = @transform_5, window_bounds = array<i64: 512, 1024>}, {pipeline_mode = #tpu.pipeline_mode<synchronous>, transform_indices = @transform_6, window_bounds = array<i64: 1, 1024>}, {pipeline_mode = #tpu.pipeline_mode<synchronous>, transform_indices = @transform_7, window_bounds = array<i64: 1024, 32>}, {transform_indices = @transform_8, window_bounds = array<i64: 64, 32>}]} {
    %c0 = arith.constant 0 : index
    %c0_0 = arith.constant 0 : index
    %0 = vector.load %arg1[%c0, %c0_0] : memref<64x32xf32, #tpu.memory_space<vmem>>, vector<64x32xf32>
    %1 = arith.truncf %0 : vector<64x32xf32> to vector<64x32xbf16>
    %c0_1 = arith.constant 0 : index
    %c0_2 = arith.constant 0 : index
    %2 = vector.load %arg2[%c0_1, %c0_2] : memref<32x128xbf16, #tpu.memory_space<vmem>>, vector<32x128xbf16>
    %cst = arith.constant dense<0.000000e+00> : vector<64x128xf32>
    %3 = tpu.matmul %1, %2, %cst {dimension_numbers = #tpu.dot_dimension_numbers<[1], [0], [0], [1], [0, 0, 1, 1], [], []>} : vector<64x32xbf16>, vector<32x128xbf16>, vector<64x128xf32> -> vector<64x128xf32>
    %c0_3 = arith.constant 0 : index
    %c0_4 = arith.constant 0 : index
    %4 = vector.load %arg3[%c0_3, %c0_4] : memref<1x128xf32, #tpu.memory_space<vmem>>, vector<1x128xf32>
    %5 = vector.broadcast %4 : vector<1x128xf32> to vector<64x128xf32>
    %6 = arith.addf %3, %5 : vector<64x128xf32>
    %cst_5 = arith.constant 0.000000e+00 : f32
    %7 = vector.broadcast %cst_5 : f32 to vector<64x128xf32>
    %8 = arith.maximumf %6, %7 : vector<64x128xf32>
    %9 = arith.truncf %8 : vector<64x128xf32> to vector<64x128xbf16>
    %c0_6 = arith.constant 0 : index
    %c0_7 = arith.constant 0 : index
    %10 = vector.load %arg4[%c0_6, %c0_7] : memref<128x512xbf16, #tpu.memory_space<vmem>>, vector<128x512xbf16>
    %cst_8 = arith.constant dense<0.000000e+00> : vector<64x512xf32>
    %11 = tpu.matmul %9, %10, %cst_8 {dimension_numbers = #tpu.dot_dimension_numbers<[1], [0], [0], [1], [0, 0, 1, 1], [], []>} : vector<64x128xbf16>, vector<128x512xbf16>, vector<64x512xf32> -> vector<64x512xf32>
    %c0_9 = arith.constant 0 : index
    %c0_10 = arith.constant 0 : index
    %12 = vector.load %arg5[%c0_9, %c0_10] : memref<1x512xf32, #tpu.memory_space<vmem>>, vector<1x512xf32>
    %13 = vector.broadcast %12 : vector<1x512xf32> to vector<64x512xf32>
    %14 = arith.addf %11, %13 : vector<64x512xf32>
    %cst_11 = arith.constant 0.000000e+00 : f32
    %15 = vector.broadcast %cst_11 : f32 to vector<64x512xf32>
    %16 = arith.maximumf %14, %15 : vector<64x512xf32>
    %17 = arith.truncf %16 : vector<64x512xf32> to vector<64x512xbf16>
    %c0_12 = arith.constant 0 : index
    %c0_13 = arith.constant 0 : index
    %18 = vector.load %arg6[%c0_12, %c0_13] : memref<512x1024xbf16, #tpu.memory_space<vmem>>, vector<512x1024xbf16>
    %cst_14 = arith.constant dense<0.000000e+00> : vector<64x1024xf32>
    %19 = tpu.matmul %17, %18, %cst_14 {dimension_numbers = #tpu.dot_dimension_numbers<[1], [0], [0], [1], [0, 0, 1, 1], [], []>} : vector<64x512xbf16>, vector<512x1024xbf16>, vector<64x1024xf32> -> vector<64x1024xf32>
    %c0_15 = arith.constant 0 : index
    %c0_16 = arith.constant 0 : index
    %20 = vector.load %arg7[%c0_15, %c0_16] : memref<1x1024xf32, #tpu.memory_space<vmem>>, vector<1x1024xf32>
    %21 = vector.broadcast %20 : vector<1x1024xf32> to vector<64x1024xf32>
    %22 = arith.addf %19, %21 : vector<64x1024xf32>
    %23 = tpu.concatenate %0, %0, %0, %0, %0, %0, %0, %0, %0, %0, %0, %0, %0, %0, %0, %0, %0, %0, %0, %0, %0, %0, %0, %0, %0, %0, %0, %0, %0, %0, %0, %0 in 1 : vector<64x32xf32>, vector<64x32xf32>, vector<64x32xf32>, vector<64x32xf32>, vector<64x32xf32>, vector<64x32xf32>, vector<64x32xf32>, vector<64x32xf32>, vector<64x32xf32>, vector<64x32xf32>, vector<64x32xf32>, vector<64x32xf32>, vector<64x32xf32>, vector<64x32xf32>, vector<64x32xf32>, vector<64x32xf32>, vector<64x32xf32>, vector<64x32xf32>, vector<64x32xf32>, vector<64x32xf32>, vector<64x32xf32>, vector<64x32xf32>, vector<64x32xf32>, vector<64x32xf32>, vector<64x32xf32>, vector<64x32xf32>, vector<64x32xf32>, vector<64x32xf32>, vector<64x32xf32>, vector<64x32xf32>, vector<64x32xf32>, vector<64x32xf32> -> vector<64x1024xf32>
    %24 = arith.mulf %23, %22 : vector<64x1024xf32>
    %25 = arith.truncf %24 : vector<64x1024xf32> to vector<64x1024xbf16>
    %c0_17 = arith.constant 0 : index
    %c0_18 = arith.constant 0 : index
    %26 = vector.load %arg8[%c0_17, %c0_18] : memref<1024x32xbf16, #tpu.memory_space<vmem>>, vector<1024x32xbf16>
    %cst_19 = arith.constant dense<0.000000e+00> : vector<64x32xf32>
    %27 = tpu.matmul %25, %26, %cst_19 {dimension_numbers = #tpu.dot_dimension_numbers<[1], [0], [0], [1], [0, 0, 1, 1], [], []>} : vector<64x1024xbf16>, vector<1024x32xbf16>, vector<64x32xf32> -> vector<64x32xf32>
    %c0_20 = arith.constant 0 : index
    %c0_21 = arith.constant 0 : index
    %28 = vector.load %arg9[%c0_20, %c0_21] : memref<64x32xf32, #tpu.memory_space<vmem>>, vector<64x32xf32>
    tpu.vector_store %arg9[%c0_20, %c0_21], %27 {strides = array<i32>} : memref<64x32xf32, #tpu.memory_space<vmem>>, vector<64x32xf32>,
    return
  }
  func.func @transform_0(%arg0: i32) -> (i32, i32) {
    %c0_i32 = arith.constant 0 : i32
    %c0_i32_0 = arith.constant 0 : i32
    return %arg0, %c0_i32 : i32, i32
  }
  func.func @transform_1(%arg0: i32) -> (i32, i32) {
    %c0_i32 = arith.constant 0 : i32
    %c0_i32_0 = arith.constant 0 : i32
    %c0_i32_1 = arith.constant 0 : i32
    return %c0_i32, %c0_i32_0 : i32, i32
  }
  func.func @transform_2(%arg0: i32) -> (i32, i32) {
    %c0_i32 = arith.constant 0 : i32
    %c0_i32_0 = arith.constant 0 : i32
    %c0_i32_1 = arith.constant 0 : i32
    return %c0_i32, %c0_i32_0 : i32, i32
  }
  func.func @transform_3(%arg0: i32) -> (i32, i32) {
    %c0_i32 = arith.constant 0 : i32
    %c0_i32_0 = arith.constant 0 : i32
    %c0_i32_1 = arith.constant 0 : i32
    return %c0_i32, %c0_i32_0 : i32, i32
  }
  func.func @transform_4(%arg0: i32) -> (i32, i32) {
    %c0_i32 = arith.constant 0 : i32
    %c0_i32_0 = arith.constant 0 : i32
    %c0_i32_1 = arith.constant 0 : i32
    return %c0_i32, %c0_i32_0 : i32, i32
  }
  func.func @transform_5(%arg0: i32) -> (i32, i32) {
    %c0_i32 = arith.constant 0 : i32
    %c0_i32_0 = arith.constant 0 : i32
    %c0_i32_1 = arith.constant 0 : i32
    return %c0_i32, %c0_i32_0 : i32, i32
  }
  func.func @transform_6(%arg0: i32) -> (i32, i32) {
    %c0_i32 = arith.constant 0 : i32
    %c0_i32_0 = arith.constant 0 : i32
    %c0_i32_1 = arith.constant 0 : i32
    return %c0_i32, %c0_i32_0 : i32, i32
  }
  func.func @transform_7(%arg0: i32) -> (i32, i32) {
    %c0_i32 = arith.constant 0 : i32
    %c0_i32_0 = arith.constant 0 : i32
    %c0_i32_1 = arith.constant 0 : i32
    return %c0_i32, %c0_i32_0 : i32, i32
  }
  func.func @transform_8(%arg0: i32) -> (i32, i32) {
    %c0_i32 = arith.constant 0 : i32
    %c0_i32_0 = arith.constant 0 : i32
    return %arg0, %c0_i32 : i32, i32
  }
}

</mosaic_0001>

<bundles_post_ra>
// kernel: tpu_custom_call.1
= control target key start
LH: loop header
LB: loop body
LE: loop exit
PB: predicated region body
PF: predicated region fallthrough
CT: control target
= control target key end

     0   :  { %13 = vsyncpa [#allocation3], 0  ;;  %s4995_s27 = smov 0   ;;  %s5938_s0 = inlined_call_operand.vmem [shape: f32[128,32], index: 0, kind: input, shape index: {}]   ;;  %s5939_s1 = inlined_call_operand.vmem [shape: bf16[32,128], index: 1, kind: input, shape index: {}]   ;;  %s5940_s2 = inlined_call_operand.vmem [shape: f32[1,128], index: 2, kind: input, shape index: {}]   ;;  %s5941_s3 = inlined_call_operand.vmem [shape: bf16[128,512], index: 3, kind: input, shape index: {}]   ;;  %s5942_s4 = inlined_call_operand.vmem [shape: f32[1,512], index: 4, kind: input, shape index: {}]   ;;  %s5943_s5 = inlined_call_operand.hbm [shape: bf16[512,1024], index: 5, kind: input, shape index: {}]   ;;  %s5944_s6 = inlined_call_operand.vmem [shape: f32[1,1024], index: 6, kind: input, shape index: {}]   ;;  %s5945_s7 = inlined_call_operand.vmem [shape: bf16[1024,32], index: 7, kind: input, shape index: {}]   ;;  %s5946_s8 = inlined_call_operand.vmem [shape: f32[128,32], index: 8, kind: output, shape index: {}]  }
   0x1 LB: > { %s4070_s28 = sadd.s32 4294967295, %s4941_s27   ;;  %p4072_p0 = scmp.ge.s32.totalorder %s4941_s27, 1  ;;  %s4941_s27 = sphi %s4995_s27, %s19_s27  }
   0x2   : > { %p223_p1 = scmp.lt.s32.totalorder %s4941_s27, 3  ;;  %s4943_s29 = smov [#allocation2]  }
   0x3   : > { %s247_s30 = sshll.u32 %s4943_s29, 4  ;;  %p5009_p3 = scmp.eq.s32.totalorder %s4070_s28, 0  ;;  %s248_s30 = int_to_ptr.vmem [resolvable:$true] %s247_s30 }
   0x4   : > { %p5003_p2 = pnand %p4072_p0, %p223_p1  ;;  %s4903_s14 = scalar_lea.hbm %s5943_s5, 32768 }
   0x5   : > { %s5951_s10 = scalar_select %p5009_p3, 1, 0 }
   0x6   : > { %s5950_s9 = scalar_select %p5003_p2, 1, 0 }
   0x7   : > { %p4752_p4 = pneg %p5003_p2  ;;  %p4904_p6 = scmp.ne.s32.totalorder %s5943_s5, %s4903_s14 }
   0x8   : > { %p4910_p10 = scmp.lt.u32.totalorder %s4903_s14, %s5943_s5 }
   0x9   : > { %p5017_p5 = pnand %p5009_p3, %p4752_p4 }
   0xb   : > { %p4905_p7 = pneg %p5017_p5 }
   0xd   : > { %p4906_p8 = pnand %p4905_p7, %p4904_p6 }
   0xf   : > { %p4907_p9 = pneg %p4906_p8 }
  0x11   : > { %p4912_p11 = pnand %p4910_p10, %p4907_p9 }
  0x13   : > { %4915 = shalt.err (!%p4912_p11)
}
  0x14   : > { %s4916_s19 = scalar_lea.vmem %s248_s30, 32768  ;;  %p4924_p1 = scmp.lt.s32.totalorder %s248_s30, %s248_s30 }
  0x15   : > { %p4917_p12 = scmp.ne.s32.totalorder %s248_s30, %s4916_s19  ;;  %p4925_p4 = scmp.lt.s32.totalorder %s4916_s19, %s4916_s19 }
  0x17   : > { %p4919_p13 = pnand %p4917_p12, %p4905_p7  ;;  %p4926_p3 = por %p4925_p4, %p4924_p1 }
  0x19   : > { %p4920_p0 = pneg %p4919_p13 }
  0x1b   : > { %p4927_p2 = pnand %p4926_p3, %p4920_p0 }
  0x1d   : > { %4930 = shalt.err (!%p4927_p2)
}
  0x1e   : > { %s4944_s20 = smov 512   ;;  %s4945_s21 = smov 32  }
  0x1f   : > { %4755 = dma.hbm_to_vmem [thread:$0]  (!%p5017_p5), %s5943_s5, 32768, %s248_s30, [#allocation3], %s4944_s20, %s4944_s20, %s4945_s21  }
  0x20   : > { %p5953_p6 = scmp.ne.s32.totalorder %s5950_s9, 0 }
  0x21   : > { %p5954_p8 = scmp.ne.s32.totalorder (!%p5953_p6), %s5951_s10, 0 }
  0x22   : > { %278 = sbr.rel (%p5953_p6) target bundleno = 1156 (0x484), region = 52 }
  0x29   : > { %4936 = dma.done.wait (%p5954_p8), [#allocation3], 32768  }
  0x2a   : > { %4938 = vsyncadd (%p5954_p8), [#allocation3], 4294934528  ;;  %s4077_s24 = sshll.u32 %s4070_s28, 3  ;;  %v4773_v0 = vld [vmem:[%s5939_s1] sm:$0xff]   ;;  %v4774_v1 = vld [vmem:[%s5939_s1 + $0x8] sm:$0xff]   ;;  %vm360_vm0 = vcmask 261120  }
  0x2b   : > { %p313_p2 = scmp.lt.s32.totalorder %s4077_s24, 15  ;;  %4608 = vmatprep.subr.bf16.mxu0 %v4773_v0  ;;  %v4775_v9 = vld [vmem:[%s5941_s3 + $0x4] ss:$16 sps:$4 sm:$0xff]   ;;  %v4777_v11 = vld [vmem:[%s5941_s3 + $0x8] ss:$16 sps:$4 sm:$0xff]   ;;  %v4946_v46 = vmov 0  }
  0x2c   : > { %4609 = vmatpush3.bf16.msra.mxu0 %v4773_v0  ;;  %v4779_v12 = vld [vmem:[%s5941_s3 + $0xc] ss:$16 sps:$4 sm:$0xff]   ;;  %664 = vmatprep.subr.bf16.mxu1 %v4775_v9  ;;  %v4780_v14 = vld [vmem:[%s5941_s3] ss:$16 sps:$4 sm:$0xff]   ;;  %v4781_v15 = vld [vmem:[%s5941_s3 + $0x24] ss:$16 sps:$4 sm:$0xff]  }
  0x2d   : > { %s5956_s24 = smov (!%p313_p2, %s4077_s24), 15  ;;  %4610 = vmatprep.subr.bf16.mxu0 %v4774_v1  ;;  %665 = vmatpush1.bf16.msra.mxu1 %v4780_v14  ;;  %v4785_v18 = vld [vmem:[%s5941_s3 + $0x2c] ss:$16 sps:$4 sm:$0xff]   ;;  %v4786_v19 = vld [vmem:[%s5941_s3 + $0x20] ss:$16 sps:$4 sm:$0xff]   ;;  %s4947_s9 = smov 32  }
  0x2e   : > { %s4078_s25 = sshll.u32 %s5956_s24, 3  ;;  %666 = vmatprep.subr.bf16.mxu1 %v4781_v15  ;;  %v4787_v20 = vld [vmem:[%s5941_s3 + $0x44] ss:$16 sps:$4 sm:$0xff]   ;;  %v4783_v21 = vld [vmem:[%s5941_s3 + $0x28] ss:$16 sps:$4 sm:$0xff]   ;;  %696 = vmatprep.mubr.bf16.mxu1 %v4946_v46  ;;  %s4948_s11 = smov 64  }
  0x2f   : > { %s5053_s30 = scalar_lea.vmem %s5938_s0, %s4078_s25  ;;  %v4791_v22 = vld [vmem:[%s5941_s3 + $0x4c] ss:$16 sps:$4 sm:$0xff]   ;;  %v4792_v23 = vld [vmem:[%s5941_s3 + $0x40] ss:$16 sps:$4 sm:$0xff]   ;;  %v4793_v25 = vld [vmem:[%s5941_s3 + $0x64] ss:$16 sps:$4 sm:$0xff]  }
  0x30   : > { %v325_v2 = vld [vmem:[%s5053_s30] sm:$0xff]  ;;  %v326_v3 = vld [vmem:[%s5053_s30 + $0x8] sm:$0xff]  ;;  %v327_v5 = vld [vmem:[%s5053_s30 + $0x10] sm:$0xff]  ;;  %4611 = vmatpush3.bf16.msra.mxu0 %v4774_v1  ;;  %s4949_s28 = smov 96   ;;  %vm3108_vm1 = vcmask 523264   ;;  %vm3117_vm2 = vcmask 785408  }
  0x31   : > { %v333_v4 = vpack.c.bf16 %v326_v3, %v325_v2  ;;  %v328_v6 = vld [vmem:[%s5053_s30 + $0x18] sm:$0xff]  ;;  %v329_v7 = vld [vmem:[%s5053_s30 + $0x20] sm:$0xff]  ;;  %v330_v8 = vld [vmem:[%s5053_s30 + $0x28] sm:$0xff]  ;;  %737 = vmatprep.subr.bf16.mxu0 %v4779_v12  ;;  %667 = vmatpush1.bf16.msra.mxu1 %v4786_v19 }
  0x32   : > { %v334_v10 = vpack.c.bf16 %v328_v6, %v327_v5  ;;  %v335_v13 = vpack.c.bf16 %v330_v8, %v329_v7  ;;  %v331_v16 = vld [vmem:[%s5053_s30 + $0x30] sm:$0xff]  ;;  %v332_v17 = vld [vmem:[%s5053_s30 + $0x38] sm:$0xff]  ;;  %668 = vmatprep.subr.bf16.mxu1 %v4787_v20  ;;  %v858_v47 = vld [vmem:[#allocation2] sm:$0xff] }
  0x33   : > { %4612 = vmatprep.mubr.msk.bf16.mxu0 %vm360_vm0, %v333_v4  ;;  %v336_v24 = vpack.c.bf16 %v332_v17, %v331_v16  ;;  %v4789_v26 = vld [vmem:[%s5941_s3 + $0x48] ss:$16 sps:$4 sm:$0xff]   ;;  %v4797_v27 = vld [vmem:[%s5941_s3 + $0x6c] ss:$16 sps:$4 sm:$0xff]   ;;  %v4798_v29 = vld [vmem:[%s5941_s3 + $0x60] ss:$16 sps:$4 sm:$0xff]  }
  0x34   : > { %4613 = vmatmul.mubr.msk.bf16.vlgmr.msra.gmra.mrb[0].mxu0 %vm360_vm0, %v334_v10  ;;  %v4795_v28 = vld [vmem:[%s5941_s3 + $0x68] ss:$16 sps:$4 sm:$0xff]   ;;  %v4799_v30 = vld [vmem:[%s5941_s3 + $0x84] ss:$16 sps:$4 sm:$0xff]   ;;  %v4803_v31 = vld [vmem:[%s5941_s3 + $0x8c] ss:$16 sps:$4 sm:$0xff]  }
  0x35   : > { %4616 = vmatprep.mubr.msk.bf16.mxu0 %vm360_vm0, %v335_v13  ;;  %738 = vmatpush1.bf16.msra.mxu0 %v4777_v11  ;;  %v4804_v32 = vld [vmem:[%s5941_s3 + $0x80] ss:$16 sps:$4 sm:$0xff]   ;;  %v4805_v33 = vld [vmem:[%s5941_s3 + $0xa4] ss:$16 sps:$4 sm:$0xff]   ;;  %v4801_v34 = vld [vmem:[%s5941_s3 + $0x88] ss:$16 sps:$4 sm:$0xff]  }
  0x36   : > { %739 = vmatprep.subr.bf16.mxu0 %v4785_v18  ;;  %669 = vmatpush1.bf16.msra.mxu1 %v4792_v23  ;;  %v4809_v35 = vld [vmem:[%s5941_s3 + $0xac] ss:$16 sps:$4 sm:$0xff]   ;;  %v4810_v36 = vld [vmem:[%s5941_s3 + $0xa0] ss:$16 sps:$4 sm:$0xff]   ;;  %v4807_v37 = vld [vmem:[%s5941_s3 + $0xa8] ss:$16 sps:$4 sm:$0xff]  }
  0x37   : > { %670 = vmatprep.subr.bf16.mxu1 %v4793_v25  ;;  %v4811_v38 = vld [vmem:[%s5941_s3 + $0xc4] ss:$16 sps:$4 sm:$0xff]   ;;  %v4815_v39 = vld [vmem:[%s5941_s3 + $0xcc] ss:$16 sps:$4 sm:$0xff]   ;;  %v4813_v40 = vld [vmem:[%s5941_s3 + $0xc8] ss:$16 sps:$4 sm:$0xff]  }
  0x38   : > { %v4816_v41 = vld [vmem:[%s5941_s3 + $0xc0] ss:$16 sps:$4 sm:$0xff]   ;;  %v4817_v42 = vld [vmem:[%s5941_s3 + $0xe4] ss:$16 sps:$4 sm:$0xff]   ;;  %v4821_v43 = vld [vmem:[%s5941_s3 + $0xec] ss:$16 sps:$4 sm:$0xff]  }
  0x39   : > { %740 = vmatpush1.bf16.msra.mxu0 %v4783_v21  ;;  %v4819_v44 = vld [vmem:[%s5941_s3 + $0xe8] ss:$16 sps:$4 sm:$0xff]   ;;  %v4822_v45 = vld [vmem:[%s5941_s3 + $0xe0] ss:$16 sps:$4 sm:$0xff]  }
  0x3a   : > { %741 = vmatprep.subr.bf16.mxu0 %v4791_v22  ;;  %671 = vmatpush1.bf16.msra.mxu1 %v4798_v29  ;;  %v862_v48 = vld [vmem:[#allocation2 + $0x20] sm:$0xff]  ;;  %v859_v49 = vld [vmem:[#allocation2 + $0x8] sm:$0xff] }
  0x3b   : > { %672 = vmatprep.subr.bf16.mxu1 %v4799_v30  ;;  %v4120_v50 = vcombine.low %v858_v47, %v862_v48  ;;  %v4121_v51 = vcombine.high %v858_v47, %v862_v48  ;;  %v863_v52 = vld [vmem:[#allocation2 + $0x28] sm:$0xff]  ;;  %v4081_v55 = vld [vmem:[%s5940_s2] ss:$0 sm:$0xff] }
  0x3c   : > { %4617 = vmatmul.mubr.msk.bf16.gmra.mrb[4].mxu0 %vm360_vm0, %v336_v24  ;;  %v4122_v53 = vcombine.low %v859_v49, %v863_v52  ;;  %v4123_v54 = vcombine.high %v859_v49, %v863_v52  ;;  %v866_v2 = vld [vmem:[#allocation2 + $0x40] sm:$0xff]  ;;  %v867_v6 = vld [vmem:[#allocation2 + $0x48] sm:$0xff] }
  0x3d   : > { %742 = vmatpush1.bf16.msra.mxu0 %v4789_v26  ;;  %769 = vmatprep.mubr.bf16.mxu0 %v4946_v46  ;;  %v870_v5 = vld [vmem:[#allocation2 + $0x60] sm:$0xff]  ;;  %v871_v7 = vld [vmem:[#allocation2 + $0x68] sm:$0xff] }
  0x3e   : > { %743 = vmatprep.subr.bf16.mxu0 %v4797_v27  ;;  %673 = vmatpush1.bf16.msra.mxu1 %v4804_v32  ;;  %v4129_v13 = vcombine.high %v866_v2, %v870_v5  ;;  %v4131_v14 = vcombine.high %v867_v6, %v871_v7  ;;  %v874_v15 = vld [vmem:[#allocation2 + $0x80] sm:$0xff]  ;;  %v875_v19 = vld [vmem:[#allocation2 + $0x88] sm:$0xff]  ;;  %v4128_v26 = vcombine.low %v866_v2, %v870_v5 }
  0x3f   : > { %674 = vmatprep.subr.bf16.mxu1 %v4805_v33  ;;  %v878_v18 = vld [vmem:[#allocation2 + $0xa0] sm:$0xff]  ;;  %v879_v20 = vld [vmem:[#allocation2 + $0xa8] sm:$0xff]  ;;  %v4130_v27 = vcombine.low %v867_v6, %v871_v7 }
  0x40   : > { %v4137_v29 = vcombine.high %v874_v15, %v878_v18  ;;  %v4139_v30 = vcombine.high %v875_v19, %v879_v20  ;;  %v886_v33 = vld [vmem:[#allocation2 + $0xe0] sm:$0xff]  ;;  %v915_v5 = vld [vmem:[#allocation2 + $0x1c8] sm:$0xff] }
  0x41   : > { %744 = vmatpush1.bf16.msra.mxu0 %v4795_v28  ;;  %v902_v52 = vld [vmem:[#allocation2 + $0x160] sm:$0xff]  ;;  %v919_v6 = vld [vmem:[#allocation2 + $0x1e8] sm:$0xff] }
  0x42   : > { %745 = vmatprep.subr.bf16.mxu0 %v4803_v31  ;;  %675 = vmatpush1.bf16.msra.mxu1 %v4810_v36  ;;  %v882_v31 = vld [vmem:[#allocation2 + $0xc0] sm:$0xff] }
  0x43   : > { %676 = vmatprep.subr.bf16.mxu1 %v4811_v38  ;;  %v4136_v38 = vcombine.low %v874_v15, %v878_v18  ;;  %v4144_v47 = vcombine.low %v882_v31, %v886_v33  ;;  %v4178_v15 = vcombine.low %v915_v5, %v919_v6  ;;  %v930_v18 = vld [vmem:[#allocation2 + $0x240] sm:$0xff] }
  0x45   : > { %746 = vmatpush1.bf16.msra.mxu0 %v4801_v34  ;;  %v883_v34 = vld [vmem:[#allocation2 + $0xc8] sm:$0xff] }
  0x46   : > { %747 = vmatprep.subr.bf16.mxu0 %v4809_v35  ;;  %677 = vmatpush1.bf16.msra.mxu1 %v4816_v41  ;;  %v887_v35 = vld [vmem:[#allocation2 + $0xe8] sm:$0xff] }
  0x47   : > { %678 = vmatprep.subr.bf16.mxu1 %v4817_v42  ;;  %v4147_v41 = vcombine.high %v883_v34, %v887_v35  ;;  %v890_v42 = vld [vmem:[#allocation2 + $0x100] sm:$0xff]  ;;  %v4146_v48 = vcombine.low %v883_v34, %v887_v35 }
  0x48   : > { %v946_v34 = vld [vmem:[#allocation2 + $0x2c0] sm:$0xff] }
  0x49   : > { %748 = vmatpush1.bf16.msra.mxu0 %v4807_v37  ;;  %v950_v35 = vld [vmem:[#allocation2 + $0x2e0] sm:$0xff] }
  0x4a   : > { %749 = vmatprep.subr.bf16.mxu0 %v4815_v39  ;;  %679 = vmatpush1.bf16.msra.mxu1 %v4822_v45  ;;  %v4138_v39 = vcombine.low %v875_v19, %v879_v20  ;;  %v895_v45 = vld [vmem:[#allocation2 + $0x128] sm:$0xff]  ;;  %v934_v19 = vld [vmem:[#allocation2 + $0x260] sm:$0xff] }
  0x4b   : > { %2436 = vmatprep.subr.bf16.mxu1 %v4121_v51  ;;  %v898_v51 = vld [vmem:[#allocation2 + $0x140] sm:$0xff]  ;;  %v931_v20 = vld [vmem:[#allocation2 + $0x248] sm:$0xff] }
  0x4d   : > { %750 = vmatpush1.bf16.msra.mxu0 %v4813_v40  ;;  %v4145_v40 = vcombine.high %v882_v31, %v886_v33 }
  0x4e   : > { %751 = vmatprep.subr.bf16.mxu0 %v4821_v43  ;;  %v894_v43 = vld [vmem:[#allocation2 + $0x120] sm:$0xff] }
  0x4f   : > { %v4153_v49 = vcombine.high %v890_v42, %v894_v43 }
  0x51   : > { %752 = vmatpush1.bf16.msra.mxu0 %v4819_v44  ;;  %v891_v44 = vld [vmem:[#allocation2 + $0x108] sm:$0xff] }
  0x52   : > { %2582 = vmatprep.subr.bf16.mxu0 %v4123_v54  ;;  %v903_v54 = vld [vmem:[#allocation2 + $0x168] sm:$0xff] }
 0x107   : > { %v4614_v56 = vpop.f32.mrb[0].mxu0 }
 0x108   : > { %v416_v57 = vadd.f32 %v4614_v56, %v4081_v55  ;;  %v407_v58 = vpop.f32.mrb[1].mxu0  ;;  %v4154_v56 = vcombine.low %v891_v44, %v895_v45 }
 0x109   : > { %v408_v59 = vadd.f32 %v4081_v55, %v407_v58  ;;  %v4615_v60 = vpop.f32.mrb[2].mxu0 }
 0x10a   : > { %v419_v61 = vadd.f32 %v4615_v60, %v4081_v55  ;;  %v410_v62 = vpop.f32.mrb[3].mxu0  ;;  %v440_v0 = vmax.f32 %v416_v57, 0.0  ;;  %v4161_v57 = vcombine.high %v898_v51, %v902_v52  ;;  %v910_v60 = vld [vmem:[#allocation2 + $0x1a0] sm:$0xff] }
 0x10b   : > { %v411_v63 = vadd.f32 %v4081_v55, %v410_v62  ;;  %v438_v3 = vmax.f32 %v408_v59, 0.0  ;;  %v906_v59 = vld [vmem:[#allocation2 + $0x180] sm:$0xff]  ;;  %v911_v62 = vld [vmem:[#allocation2 + $0x1a8] sm:$0xff] }
 0x10c   : > { %v441_v1 = vmax.f32 %v419_v61, 0.0  ;;  %v907_v61 = vld [vmem:[#allocation2 + $0x188] sm:$0xff]  ;;  %v4168_v7 = vcombine.low %v906_v59, %v910_v60 }
 0x10d   : > { %v439_v4 = vmax.f32 %v411_v63, 0.0  ;;  %v4160_v63 = vcombine.low %v898_v51, %v902_v52  ;;  %v4171_v2 = vcombine.high %v907_v61, %v911_v62  ;;  %v962_v51 = vld [vmem:[#allocation2 + $0x340] sm:$0xff] }
 0x10e   : > { %v447_v8 = vpack.c.bf16 %v441_v1, %v440_v0  ;;  %v4169_v1 = vcombine.high %v906_v59, %v910_v60  ;;  %v966_v52 = vld [vmem:[#allocation2 + $0x360] sm:$0xff] }
 0x10f   : > { %v446_v9 = vpack.c.bf16 %v439_v4, %v438_v3  ;;  %v4618_v10 = vpop.f32.mrb[4].mxu0  ;;  %v914_v3 = vld [vmem:[#allocation2 + $0x1c0] sm:$0xff]  ;;  %v4224_v59 = vcombine.low %v962_v51, %v966_v52 }
 0x110   : > { %v432_v11 = vadd.f32 %v4618_v10, %v4081_v55  ;;  %v423_v12 = vpop.f32.mrb[5].mxu0  ;;  %v918_v4 = vld [vmem:[#allocation2 + $0x1e0] sm:$0xff] }
 0x111   : > { %697 = vmatmul.mubr.bf16.vlgmr.msra.gmra.mrb[0].mxu1 %v446_v9  ;;  %770 = vmatmul.mubr.bf16.vlgmr.msra.gmra.mrb[8].mxu0 %v446_v9  ;;  %v424_v16 = vadd.f32 %v4081_v55, %v423_v12  ;;  %v4619_v17 = vpop.f32.mrb[6].mxu0  ;;  %v4177_v9 = vcombine.high %v914_v3, %v918_v4  ;;  %v922_v10 = vld [vmem:[#allocation2 + $0x200] sm:$0xff]  ;;  %v923_v12 = vld [vmem:[#allocation2 + $0x208] sm:$0xff] }
 0x112   : > { %v444_v21 = vmax.f32 %v432_v11, 0.0  ;;  %706 = vmatprep.mubr.bf16.mxu1 %v4946_v46  ;;  %779 = vmatprep.mubr.bf16.mxu0 %v4946_v46  ;;  %v435_v22 = vadd.f32 %v4619_v17, %v4081_v55  ;;  %v426_v23 = vpop.f32.mrb[7].mxu0  ;;  %v926_v11 = vld [vmem:[#allocation2 + $0x220] sm:$0xff] }
 0x113   : > { %v442_v24 = vmax.f32 %v424_v16, 0.0  ;;  %v427_v25 = vadd.f32 %v4081_v55, %v426_v23  ;;  %2437 = vmatpush1.bf16.msra.mxu1 %v4120_v50  ;;  %2583 = vmatpush1.bf16.msra.mxu0 %v4122_v53  ;;  %v4155_v50 = vcombine.high %v891_v44, %v895_v45  ;;  %v899_v53 = vld [vmem:[#allocation2 + $0x148] sm:$0xff]  ;;  %v4152_v55 = vcombine.low %v890_v42, %v894_v43  ;;  %v954_v42 = vld [vmem:[#allocation2 + $0x300] sm:$0xff] }
 0x114   : > { %v445_v28 = vmax.f32 %v435_v22, 0.0  ;;  %2438 = vmatprep.subr.bf16.mxu1 %v4129_v13  ;;  %2584 = vmatprep.subr.bf16.mxu0 %v4131_v14  ;;  %v4163_v58 = vcombine.high %v899_v53, %v903_v54  ;;  %v4162_v0 = vcombine.low %v899_v53, %v903_v54  ;;  %v927_v13 = vld [vmem:[#allocation2 + $0x228] sm:$0xff]  ;;  %v4176_v14 = vcombine.low %v914_v3, %v918_v4  ;;  %v958_v43 = vld [vmem:[#allocation2 + $0x320] sm:$0xff] }
 0x115   : > { %v443_v32 = vmax.f32 %v427_v25, 0.0  ;;  %v4185_v16 = vcombine.high %v922_v10, %v926_v11  ;;  %v4187_v17 = vcombine.high %v923_v12, %v927_v13  ;;  %v4184_v22 = vcombine.low %v922_v10, %v926_v11  ;;  %v955_v44 = vld [vmem:[#allocation2 + $0x308] sm:$0xff] }
 0x116   : > { %v5176_v36 = vpack.c.bf16 %v445_v28, %v444_v21  ;;  %v935_v21 = vld [vmem:[#allocation2 + $0x268] sm:$0xff]  ;;  %v4186_v23 = vcombine.low %v923_v12, %v927_v13  ;;  %v5184_v12 = vld [vmem:[#allocation2 + $0x400] sm:$0xff] }
 0x117   : > { %v448_v37 = vpack.c.bf16 %v443_v32, %v442_v24  ;;  %2439 = vmatpush1.bf16.msra.mxu1 %v4128_v26  ;;  %2585 = vmatpush1.bf16.msra.mxu0 %v4130_v27  ;;  %v4193_v24 = vcombine.high %v930_v18, %v934_v19  ;;  %v4195_v25 = vcombine.high %v931_v20, %v935_v21  ;;  %v938_v26 = vld [vmem:[#allocation2 + $0x280] sm:$0xff]  ;;  %v939_v28 = vld [vmem:[#allocation2 + $0x288] sm:$0xff] }
 0x118   : > { %2440 = vmatprep.subr.bf16.mxu1 %v4137_v29  ;;  %2586 = vmatprep.subr.bf16.mxu0 %v4139_v30  ;;  %v942_v27 = vld [vmem:[#allocation2 + $0x2a0] sm:$0xff]  ;;  %v943_v29 = vld [vmem:[#allocation2 + $0x2a8] sm:$0xff]  ;;  %v4192_v30 = vcombine.low %v930_v18, %v934_v19  ;;  %v4194_v31 = vcombine.low %v931_v20, %v935_v21  ;;  %v484_v20 = vlaneseq }
 0x119   : > { %707 = vmatmul.mubr.bf16.gmra.mrb[4].mxu1 %v447_v8  ;;  %780 = vmatmul.mubr.bf16.gmra.mrb[12].mxu0 %v447_v8  ;;  %v4170_v8 = vcombine.low %v907_v61, %v911_v62  ;;  %v4201_v32 = vcombine.high %v938_v26, %v942_v27  ;;  %v4203_v33 = vcombine.high %v939_v28, %v943_v29  ;;  %v959_v45 = vld [vmem:[#allocation2 + $0x328] sm:$0xff]  ;;  %v970_v61 = vld [vmem:[#allocation2 + $0x380] sm:$0xff] }
 0x11a   : > { %716 = vmatprep.mubr.bf16.mxu1 %v4946_v46  ;;  %789 = vmatprep.mubr.bf16.mxu0 %v4946_v46  ;;  %v963_v53 = vld [vmem:[#allocation2 + $0x348] sm:$0xff]  ;;  %v974_v62 = vld [vmem:[#allocation2 + $0x3a0] sm:$0xff]  ;;  %v5200_v21 = vshrl.u32 %v484_v20, 7 }
 0x11b   : > { %2441 = vmatpush1.bf16.msra.mxu1 %v4136_v38  ;;  %2587 = vmatpush1.bf16.msra.mxu0 %v4138_v39  ;;  %v4200_v38 = vcombine.low %v938_v26, %v942_v27  ;;  %v4202_v39 = vcombine.low %v939_v28, %v943_v29  ;;  %v967_v54 = vld [vmem:[#allocation2 + $0x368] sm:$0xff]  ;;  %v5186_v13 = vld [vmem:[#allocation2 + $0x420] sm:$0xff] }
 0x11c   : > { %2442 = vmatprep.subr.bf16.mxu1 %v4145_v40  ;;  %2588 = vmatprep.subr.bf16.mxu0 %v4147_v41  ;;  %v4209_v40 = vcombine.high %v946_v34, %v950_v35  ;;  %v4226_v60 = vcombine.low %v963_v53, %v967_v54  ;;  %v498_v26 = vsub.s32 3, %v5200_v21 }
 0x11f   : > { %2443 = vmatpush1.bf16.msra.mxu1 %v4144_v47  ;;  %2589 = vmatpush1.bf16.msra.mxu0 %v4146_v48  ;;  %v4208_v47 = vcombine.low %v946_v34, %v950_v35 }
 0x120   : > { %2444 = vmatprep.subr.bf16.mxu1 %v4153_v49  ;;  %2590 = vmatprep.subr.bf16.mxu0 %v4155_v50  ;;  %v4217_v49 = vcombine.high %v954_v42, %v958_v43  ;;  %v4219_v50 = vcombine.high %v955_v44, %v959_v45 }
 0x121   : > { %717 = vmatmul.mubr.bf16.gmra.mrb[8].mxu1 %v448_v37  ;;  %790 = vmatmul.mubr.bf16.gmra.mrb[16].mxu0 %v448_v37  ;;  %v951_v37 = vld [vmem:[#allocation2 + $0x2e8] sm:$0xff] }
 0x122   : > { %726 = vmatprep.mubr.bf16.mxu1 %v4946_v46  ;;  %799 = vmatprep.mubr.bf16.mxu0 %v4946_v46  ;;  %v4179_v46 = vcombine.high %v915_v5, %v919_v6  ;;  %v978_v5 = vld [vmem:[#allocation2 + $0x3c0] sm:$0xff] }
 0x123   : > { %2445 = vmatpush1.bf16.msra.mxu1 %v4152_v55  ;;  %2591 = vmatpush1.bf16.msra.mxu0 %v4154_v56  ;;  %v4216_v55 = vcombine.low %v954_v42, %v958_v43  ;;  %v4218_v56 = vcombine.low %v955_v44, %v959_v45  ;;  %v982_v6 = vld [vmem:[#allocation2 + $0x3e0] sm:$0xff] }
 0x124   : > { %2446 = vmatprep.subr.bf16.mxu1 %v4161_v57  ;;  %2592 = vmatprep.subr.bf16.mxu0 %v4163_v58  ;;  %v4225_v57 = vcombine.high %v962_v51, %v966_v52  ;;  %v4227_v58 = vcombine.high %v963_v53, %v967_v54  ;;  %v5233_v52 = vld [vmem:[#allocation2 + $0x440] sm:$0xff] }
 0x125   : > { %v5235_v53 = vld [vmem:[#allocation2 + $0x460] sm:$0xff] }
 0x127   : > { %2447 = vmatpush1.bf16.msra.mxu1 %v4160_v63  ;;  %2593 = vmatpush1.bf16.msra.mxu0 %v4162_v0  ;;  %v971_v63 = vld [vmem:[#allocation2 + $0x388] sm:$0xff]  ;;  %v4233_v0 = vcombine.high %v970_v61, %v974_v62 }
 0x128   : > { %2448 = vmatprep.subr.bf16.mxu1 %v4169_v1  ;;  %2594 = vmatprep.subr.bf16.mxu0 %v4171_v2  ;;  %v975_v1 = vld [vmem:[#allocation2 + $0x3a8] sm:$0xff]  ;;  %v4232_v2 = vcombine.low %v970_v61, %v974_v62  ;;  %v5241_v62 = vld [vmem:[#allocation2 + $0x480] sm:$0xff] }
 0x129   : > { %727 = vmatmul.mubr.bf16.gmra.mrb[12].mxu1 %v5176_v36  ;;  %800 = vmatmul.mubr.bf16.gmra.mrb[20].mxu0 %v5176_v36  ;;  %v947_v36 = vld [vmem:[#allocation2 + $0x2c8] sm:$0xff]  ;;  %v4234_v3 = vcombine.low %v971_v63, %v975_v1  ;;  %v4235_v4 = vcombine.high %v971_v63, %v975_v1  ;;  %v5243_v63 = vld [vmem:[#allocation2 + $0x4a0] sm:$0xff] }
 0x12a   : > { %v4211_v41 = vcombine.high %v947_v36, %v951_v37  ;;  %v4210_v48 = vcombine.low %v947_v36, %v951_v37 }
 0x12b   : > { %2449 = vmatpush1.bf16.msra.mxu1 %v4168_v7  ;;  %2595 = vmatpush1.bf16.msra.mxu0 %v4170_v8  ;;  %v979_v7 = vld [vmem:[#allocation2 + $0x3c8] sm:$0xff]  ;;  %v4241_v8 = vcombine.high %v978_v5, %v982_v6 }
 0x12c   : > { %2450 = vmatprep.subr.bf16.mxu1 %v4177_v9  ;;  %2596 = vmatprep.subr.bf16.mxu0 %v4179_v46  ;;  %v983_v9 = vld [vmem:[#allocation2 + $0x3e8] sm:$0xff]  ;;  %v4240_v46 = vcombine.low %v978_v5, %v982_v6  ;;  %v4257_v5 = vcombine.high %v5233_v52, %v5235_v53 }
 0x12d   : > { %v4242_v10 = vcombine.low %v979_v7, %v983_v9  ;;  %v4243_v11 = vcombine.high %v979_v7, %v983_v9 }
 0x12f   : > { %2451 = vmatpush1.bf16.msra.mxu1 %v4176_v14  ;;  %2597 = vmatpush1.bf16.msra.mxu0 %v4178_v15  ;;  %v5188_v14 = vld [vmem:[#allocation2 + $0x408] sm:$0xff]  ;;  %v4249_v15 = vcombine.high %v5184_v12, %v5186_v13 }
 0x130   : > { %2452 = vmatprep.subr.bf16.mxu1 %v4185_v16  ;;  %2598 = vmatprep.subr.bf16.mxu0 %v4187_v17  ;;  %v5192_v16 = vld [vmem:[#allocation2 + $0x428] sm:$0xff]  ;;  %v4248_v17 = vcombine.low %v5184_v12, %v5186_v13 }
 0x131   : > { %v4250_v18 = vcombine.low %v5188_v14, %v5192_v16  ;;  %v4251_v19 = vcombine.high %v5188_v14, %v5192_v16  ;;  %v5287_v14 = vld [vmem:[#allocation2 + $0x4e8] sm:$0xff] }
 0x133   : > { %2453 = vmatpush1.bf16.msra.mxu1 %v4184_v22  ;;  %2599 = vmatpush1.bf16.msra.mxu0 %v4186_v23  ;;  %v486_v22 = vsub.s32 0, %v5200_v21  ;;  %v494_v23 = vsub.s32 2, %v5200_v21 }
 0x134   : > { %2454 = vmatprep.subr.bf16.mxu1 %v4193_v24  ;;  %2600 = vmatprep.subr.bf16.mxu0 %v4195_v25  ;;  %v482_v24 = vld [vmem:[%s5942_s4] sm:$0xf]  ;;  %v490_v25 = vsub.s32 1, %v5200_v21 }
 0x135   : > { %v5211_v27 = vrot.slane %v482_v24, %v486_v22  ;;  %v5215_v28 = vrot.slane %v482_v24, %v494_v23 }
 0x136   : > { %v5219_v29 = vrot.slane %v482_v24, %v490_v25 }
 0x137   : > { %2455 = vmatpush1.bf16.msra.mxu1 %v4192_v30  ;;  %2601 = vmatpush1.bf16.msra.mxu0 %v4194_v31  ;;  %v5223_v30 = vrot.slane %v482_v24, %v498_v26 }
 0x138   : > { %2456 = vmatprep.subr.bf16.mxu1 %v4201_v32  ;;  %2602 = vmatprep.subr.bf16.mxu0 %v4203_v33 }
 0x13b   : > { %2457 = vmatpush1.bf16.msra.mxu1 %v4200_v38  ;;  %2603 = vmatpush1.bf16.msra.mxu0 %v4202_v39 }
 0x13c   : > { %2458 = vmatprep.subr.bf16.mxu1 %v4209_v40  ;;  %2604 = vmatprep.subr.bf16.mxu0 %v4211_v41 }
 0x13f   : > { %2459 = vmatpush1.bf16.msra.mxu1 %v4208_v47  ;;  %2605 = vmatpush1.bf16.msra.mxu0 %v4210_v48 }
 0x140   : > { %2460 = vmatprep.subr.bf16.mxu1 %v4217_v49  ;;  %2606 = vmatprep.subr.bf16.mxu0 %v4219_v50 }
 0x143   : > { %2461 = vmatpush1.bf16.msra.mxu1 %v4216_v55  ;;  %2607 = vmatpush1.bf16.msra.mxu0 %v4218_v56 }
 0x144   : > { %2462 = vmatprep.subr.bf16.mxu1 %v4225_v57  ;;  %2608 = vmatprep.subr.bf16.mxu0 %v4227_v58  ;;  %v995_v58 = vld [vmem:[#allocation2 + $0x448] sm:$0xff] }
 0x147   : > { %2463 = vmatpush1.bf16.msra.mxu1 %v4224_v59  ;;  %2609 = vmatpush1.bf16.msra.mxu0 %v4226_v60  ;;  %v999_v59 = vld [vmem:[#allocation2 + $0x468] sm:$0xff] }
 0x148   : > { %2464 = vmatprep.subr.bf16.mxu1 %v4233_v0  ;;  %2610 = vmatprep.subr.bf16.mxu0 %v4235_v4  ;;  %v4256_v4 = vcombine.low %v5233_v52, %v5235_v53 }
 0x14b   : > { %2465 = vmatpush1.bf16.msra.mxu1 %v4232_v2  ;;  %2611 = vmatpush1.bf16.msra.mxu0 %v4234_v3 }
 0x14c   : > { %2466 = vmatprep.subr.bf16.mxu1 %v4241_v8  ;;  %2612 = vmatprep.subr.bf16.mxu0 %v4243_v11  ;;  %v5255_v11 = vld [vmem:[#allocation2 + $0x488] sm:$0xff] }
 0x14f   : > { %2467 = vmatpush1.bf16.msra.mxu1 %v4240_v46  ;;  %2613 = vmatpush1.bf16.msra.mxu0 %v4242_v10  ;;  %v4258_v46 = vcombine.low %v995_v58, %v999_v59  ;;  %v4259_v10 = vcombine.high %v995_v58, %v999_v59 }
 0x150   : > { %2509 = vmatprep.subr.bf16.mxu1 %v4249_v15  ;;  %2655 = vmatprep.subr.bf16.mxu0 %v4251_v19  ;;  %v5257_v15 = vld [vmem:[#allocation2 + $0x4a8] sm:$0xff] }
 0x1e4   : > { %v698_v31 = vpop.f32.mrb[0].mxu1  ;;  %v771_v32 = vpop.f32.mrb[8].mxu0 }
 0x1e5   : > { %v699_v33 = vadd.f32 %v698_v31, %v5211_v27  ;;  %v772_v34 = vadd.f32 %v771_v32, %v5215_v28  ;;  %v700_v35 = vpop.f32.mrb[1].mxu1  ;;  %v773_v36 = vpop.f32.mrb[9].mxu0  ;;  %v4265_v32 = vcombine.high %v5241_v62, %v5243_v63 }
 0x1e6   : > { %v701_v37 = vadd.f32 %v700_v35, %v5219_v29  ;;  %v774_v38 = vadd.f32 %v773_v36, %v5223_v30  ;;  %v702_v39 = vpop.f32.mrb[2].mxu1  ;;  %v775_v40 = vpop.f32.mrb[10].mxu0 }
 0x1e7   : > { %v703_v41 = vadd.f32 %v702_v39, %v5211_v27  ;;  %v776_v42 = vadd.f32 %v775_v40, %v5215_v28  ;;  %v704_v43 = vpop.f32.mrb[3].mxu1  ;;  %v777_v44 = vpop.f32.mrb[11].mxu0  ;;  %v810_v48 = vmax.f32 %v699_v33, 0.0  ;;  %v812_v49 = vmax.f32 %v772_v34, 0.0 }
 0x1e8   : > { %v705_v45 = vadd.f32 %v704_v43, %v5219_v29  ;;  %v778_v47 = vadd.f32 %v777_v44, %v5223_v30  ;;  %v811_v54 = vmax.f32 %v701_v37, 0.0  ;;  %v813_v55 = vmax.f32 %v774_v38, 0.0 }
 0x1e9   : > { %v814_v50 = vmax.f32 %v703_v41, 0.0  ;;  %v816_v51 = vmax.f32 %v776_v42, 0.0  ;;  %v4264_v37 = vcombine.low %v5241_v62, %v5243_v63  ;;  %v4267_v40 = vcombine.high %v5255_v11, %v5257_v15  ;;  %v5281_v41 = vld [vmem:[#allocation2 + $0x4c0] sm:$0xff] }
 0x1ea   : > { %v815_v56 = vmax.f32 %v705_v45, 0.0  ;;  %v817_v57 = vmax.f32 %v778_v47, 0.0  ;;  %v5283_v42 = vld [vmem:[#allocation2 + $0x4e0] sm:$0xff] }
 0x1eb   : > { %v5237_v60 = vpack.c.bf16 %v814_v50, %v810_v48  ;;  %v5239_v61 = vpack.c.bf16 %v816_v51, %v812_v49  ;;  %v5285_v49 = vld [vmem:[#allocation2 + $0x4c8] sm:$0xff]  ;;  %v4266_v50 = vcombine.low %v5255_v11, %v5257_v15  ;;  %v4273_v51 = vcombine.high %v5281_v41, %v5283_v42  ;;  %v5306_v62 = vld [vmem:[#allocation2 + $0x500] sm:$0xff] }
 0x1ec   : > { %v5245_v0 = vpack.c.bf16 %v815_v56, %v811_v54  ;;  %v5247_v1 = vpack.c.bf16 %v817_v57, %v813_v55  ;;  %v708_v2 = vpop.f32.mrb[4].mxu1  ;;  %v781_v3 = vpop.f32.mrb[12].mxu0  ;;  %v4272_v55 = vcombine.low %v5281_v41, %v5283_v42  ;;  %v4275_v59 = vcombine.high %v5285_v49, %v5287_v14 }
 0x1ed   : > { %v709_v6 = vadd.f32 %v708_v2, %v5211_v27  ;;  %v782_v7 = vadd.f32 %v781_v3, %v5215_v28  ;;  %v710_v8 = vpop.f32.mrb[5].mxu1  ;;  %v783_v9 = vpop.f32.mrb[13].mxu0 }
 0x1ee   : > { %v711_v19 = vadd.f32 %v710_v8, %v5219_v29  ;;  %v784_v20 = vadd.f32 %v783_v9, %v5223_v30  ;;  %v712_v24 = vpop.f32.mrb[6].mxu1  ;;  %v785_v31 = vpop.f32.mrb[14].mxu0  ;;  %2468 = vmatprep.mubr.bf16.mxu1 %v5245_v0  ;;  %2614 = vmatprep.mubr.bf16.mxu0 %v5245_v0  ;;  %v5318_v8 = vld [vmem:[#allocation2 + $0x528] sm:$0xff] }
 0x1ef   : > { %v713_v33 = vadd.f32 %v712_v24, %v5211_v27  ;;  %v786_v34 = vadd.f32 %v785_v31, %v5215_v28  ;;  %v714_v35 = vpop.f32.mrb[7].mxu1  ;;  %v787_v36 = vpop.f32.mrb[15].mxu0  ;;  %2469 = vmatmul.mubr.bf16.vlgmr.msra.gmra.mrb[16].mxu1 %v5237_v60  ;;  %2615 = vmatmul.mubr.bf16.vlgmr.msra.gmra.mrb[24].mxu0 %v5237_v60  ;;  %v818_v43 = vmax.f32 %v709_v6, 0.0  ;;  %v820_v44 = vmax.f32 %v782_v7, 0.0  ;;  %v5314_v6 = vld [vmem:[#allocation2 + $0x520] sm:$0xff]  ;;  %v5316_v7 = vld [vmem:[#allocation2 + $0x508] sm:$0xff] }
 0x1f0   : > { %v715_v38 = vadd.f32 %v714_v35, %v5219_v29  ;;  %v788_v39 = vadd.f32 %v787_v36, %v5223_v30  ;;  %2510 = vmatpush1.bf16.msra.mxu1 %v4248_v17  ;;  %2656 = vmatpush1.bf16.msra.mxu0 %v4250_v18  ;;  %v819_v48 = vmax.f32 %v711_v19, 0.0  ;;  %v821_v12 = vmax.f32 %v784_v20, 0.0 }
 0x1f1   : > { %v822_v45 = vmax.f32 %v713_v33, 0.0  ;;  %v824_v47 = vmax.f32 %v786_v34, 0.0  ;;  %2511 = vmatprep.subr.bf16.mxu1 %v4257_v5  ;;  %2657 = vmatprep.subr.bf16.mxu0 %v4259_v10  ;;  %v4274_v5 = vcombine.low %v5285_v49, %v5287_v14  ;;  %v5326_v33 = vld [vmem:[#allocation2 + $0x540] sm:$0xff] }
 0x1f2   : > { %v823_v13 = vmax.f32 %v715_v38, 0.0  ;;  %v825_v17 = vmax.f32 %v788_v39, 0.0  ;;  %v5328_v34 = vld [vmem:[#allocation2 + $0x560] sm:$0xff]  ;;  %v4281_v39 = vcombine.high %v5306_v62, %v5314_v6 }
 0x1f3   : > { %v5289_v16 = vpack.c.bf16 %v822_v45, %v818_v43  ;;  %v5291_v18 = vpack.c.bf16 %v824_v47, %v820_v44  ;;  %v5337_v43 = vld [vmem:[#allocation2 + $0x548] sm:$0xff]  ;;  %v4288_v14 = vcombine.low %v5326_v33, %v5328_v34 }
 0x1f4   : > { %v5297_v52 = vpack.c.bf16 %v823_v13, %v819_v48  ;;  %v5299_v53 = vpack.c.bf16 %v825_v17, %v821_v12  ;;  %2512 = vmatpush1.bf16.msra.mxu1 %v4256_v4  ;;  %2658 = vmatpush1.bf16.msra.mxu0 %v4258_v46  ;;  %v718_v54 = vpop.f32.mrb[8].mxu1  ;;  %v791_v56 = vpop.f32.mrb[16].mxu0  ;;  %v5339_v44 = vld [vmem:[#allocation2 + $0x568] sm:$0xff]  ;;  %v4282_v48 = vcombine.low %v5316_v7, %v5318_v8 }
 0x1f5   : > { %v719_v57 = vadd.f32 %v718_v54, %v5211_v27  ;;  %v720_v58 = vpop.f32.mrb[9].mxu1  ;;  %2513 = vmatprep.subr.bf16.mxu1 %v4265_v32  ;;  %2659 = vmatprep.subr.bf16.mxu0 %v4267_v40  ;;  %v792_v63 = vadd.f32 %v791_v56, %v5215_v28  ;;  %v793_v2 = vpop.f32.mrb[17].mxu0  ;;  %v4283_v40 = vcombine.high %v5316_v7, %v5318_v8 }
 0x1f6   : > { %v721_v3 = vadd.f32 %v720_v58, %v5219_v29  ;;  %v722_v4 = vpop.f32.mrb[10].mxu1  ;;  %2478 = vmatprep.mubr.bf16.mxu1 %v5297_v52  ;;  %2624 = vmatprep.mubr.bf16.mxu0 %v5297_v52  ;;  %v794_v9 = vadd.f32 %v793_v2, %v5223_v30  ;;  %v795_v46 = vpop.f32.mrb[18].mxu0  ;;  %v4289_v12 = vcombine.high %v5326_v33, %v5328_v34  ;;  %v5358_v58 = vld [vmem:[#allocation2 + $0x580] sm:$0xff] }
 0x1f7   : > { %v826_v10 = vmax.f32 %v719_v57, 0.0  ;;  %v723_v11 = vadd.f32 %v722_v4, %v5211_v27  ;;  %v724_v15 = vpop.f32.mrb[11].mxu1  ;;  %2479 = vmatmul.mubr.bf16.gmra.mrb[20].mxu1 %v5289_v16  ;;  %2625 = vmatmul.mubr.bf16.gmra.mrb[28].mxu0 %v5289_v16  ;;  %v828_v19 = vmax.f32 %v792_v63, 0.0  ;;  %v796_v20 = vadd.f32 %v795_v46, %v5215_v28  ;;  %v797_v24 = vpop.f32.mrb[19].mxu0  ;;  %v1035_v4 = vld [vmem:[#allocation2 + $0x588] sm:$0xff] }
 0x1f8   : > { %v827_v31 = vmax.f32 %v721_v3, 0.0  ;;  %v725_v32 = vadd.f32 %v724_v15, %v5219_v29  ;;  %2514 = vmatpush1.bf16.msra.mxu1 %v4264_v37  ;;  %2660 = vmatpush1.bf16.msra.mxu0 %v4266_v50  ;;  %v829_v35 = vmax.f32 %v794_v9, 0.0  ;;  %v798_v36 = vadd.f32 %v797_v24, %v5223_v30  ;;  %v1038_v3 = vld [vmem:[#allocation2 + $0x5a0] sm:$0xff] }
 0x1f9   : > { %v830_v38 = vmax.f32 %v723_v11, 0.0  ;;  %2515 = vmatprep.subr.bf16.mxu1 %v4273_v51  ;;  %2661 = vmatprep.subr.bf16.mxu0 %v4275_v59  ;;  %v832_v41 = vmax.f32 %v796_v20, 0.0  ;;  %v4280_v37 = vcombine.low %v5306_v62, %v5314_v6  ;;  %v4291_v57 = vcombine.high %v5337_v43, %v5339_v44 }
 0x1fa   : > { %v831_v42 = vmax.f32 %v725_v32, 0.0  ;;  %v833_v45 = vmax.f32 %v798_v36, 0.0  ;;  %v4290_v2 = vcombine.low %v5337_v43, %v5339_v44  ;;  %v1042_v36 = vld [vmem:[#allocation2 + $0x5c0] sm:$0xff] }
 0x1fb   : > { %v5341_v47 = vpack.c.bf16 %v830_v38, %v826_v10  ;;  %v5347_v13 = vpack.c.bf16 %v832_v41, %v828_v19  ;;  %v4887_v38 = vld [vmem:[%s5053_s30] sm:$0xff]  ;;  %v1047_v41 = vld [vmem:[#allocation2 + $0x5e8] sm:$0xff] }
 0x1fc   : > { %v5349_v17 = vpack.c.bf16 %v831_v42, %v827_v31  ;;  %2516 = vmatpush1.bf16.msra.mxu1 %v4272_v55  ;;  %2662 = vmatpush1.bf16.msra.mxu0 %v4274_v5  ;;  %v728_v49 = vpop.f32.mrb[12].mxu1  ;;  %v5353_v50 = vpack.c.bf16 %v833_v45, %v829_v35  ;;  %v801_v51 = vpop.f32.mrb[20].mxu0  ;;  %v1039_v5 = vld [vmem:[#allocation2 + $0x5a8] sm:$0xff]  ;;  %v1050_v45 = vld [vmem:[#allocation2 + $0x600] sm:$0xff] }
 0x1fd   : > { %v729_v54 = vadd.f32 %v728_v49, %v5211_v27  ;;  %v730_v56 = vpop.f32.mrb[13].mxu1  ;;  %2517 = vmatprep.subr.bf16.mxu1 %v4281_v39  ;;  %2663 = vmatprep.subr.bf16.mxu0 %v4283_v40  ;;  %v802_v55 = vadd.f32 %v801_v51, %v5215_v28  ;;  %v803_v59 = vpop.f32.mrb[21].mxu0  ;;  %v4299_v33 = vcombine.high %v1035_v4, %v1039_v5  ;;  %v1046_v39 = vld [vmem:[#allocation2 + $0x5e0] sm:$0xff]  ;;  %v1043_v40 = vld [vmem:[#allocation2 + $0x5c8] sm:$0xff] }
 0x1fe   : > { %v731_v62 = vadd.f32 %v730_v56, %v5219_v29  ;;  %v732_v63 = vpop.f32.mrb[14].mxu1  ;;  %2488 = vmatprep.mubr.bf16.mxu1 %v5349_v17  ;;  %2634 = vmatprep.mubr.bf16.mxu0 %v5349_v17  ;;  %v804_v6 = vadd.f32 %v803_v59, %v5223_v30  ;;  %v805_v7 = vpop.f32.mrb[22].mxu0  ;;  %v4298_v43 = vcombine.low %v1035_v4, %v1039_v5  ;;  %v1054_v49 = vld [vmem:[#allocation2 + $0x620] sm:$0xff]  ;;  %v1051_v51 = vld [vmem:[#allocation2 + $0x608] sm:$0xff] }
 0x1ff   : > { %v834_v8 = vmax.f32 %v729_v54, 0.0  ;;  %v733_v9 = vadd.f32 %v732_v63, %v5211_v27  ;;  %v734_v46 = vpop.f32.mrb[15].mxu1  ;;  %2489 = vmatmul.mubr.bf16.gmra.mrb[24].mxu1 %v5341_v47  ;;  %2635 = vmatmul.mubr.bf16.gmra.mrb[32].mxu0 %v5341_v47  ;;  %v836_v10 = vmax.f32 %v802_v55, 0.0  ;;  %v806_v11 = vadd.f32 %v805_v7, %v5215_v28  ;;  %v807_v15 = vpop.f32.mrb[23].mxu0  ;;  %v1055_v54 = vld [vmem:[#allocation2 + $0x628] sm:$0xff]  ;;  %v1058_v55 = vld [vmem:[#allocation2 + $0x640] sm:$0xff] }
 0x200   : > { %v835_v19 = vmax.f32 %v731_v62, 0.0  ;;  %v735_v20 = vadd.f32 %v734_v46, %v5219_v29  ;;  %2518 = vmatpush1.bf16.msra.mxu1 %v4280_v37  ;;  %2664 = vmatpush1.bf16.msra.mxu0 %v4282_v48  ;;  %v837_v24 = vmax.f32 %v804_v6, 0.0  ;;  %v808_v31 = vadd.f32 %v807_v15, %v5223_v30  ;;  %v1062_v59 = vld [vmem:[#allocation2 + $0x660] sm:$0xff]  ;;  %v1059_v62 = vld [vmem:[#allocation2 + $0x648] sm:$0xff] }
 0x201   : > { %v838_v32 = vmax.f32 %v733_v9, 0.0  ;;  %2519 = vmatprep.subr.bf16.mxu1 %v4289_v12  ;;  %2665 = vmatprep.subr.bf16.mxu0 %v4291_v57  ;;  %v4297_v27 = vcombine.high %v5358_v58, %v1038_v3  ;;  %v840_v34 = vmax.f32 %v806_v11, 0.0  ;;  %v4296_v30 = vcombine.low %v5358_v58, %v1038_v3  ;;  %v1063_v63 = vld [vmem:[#allocation2 + $0x668] sm:$0xff]  ;;  %v1066_v7 = vld [vmem:[#allocation2 + $0x680] sm:$0xff] }
 0x202   : > { %v839_v35 = vmax.f32 %v735_v20, 0.0  ;;  %v841_v28 = vmax.f32 %v808_v31, 0.0  ;;  %3028 = vrot.lane.b32.xlu0 %v4887_v38, %s4947_s9  ;;  %3052 = vrot.lane.b32.xlu1 %v4887_v38, %s4948_s11  ;;  %v4305_v48 = vcombine.high %v1042_v36, %v1046_v39  ;;  %v4307_v12 = vcombine.high %v1043_v40, %v1047_v41  ;;  %v1067_v9 = vld [vmem:[#allocation2 + $0x688] sm:$0xff]  ;;  %v1074_v20 = vld [vmem:[#allocation2 + $0x6c0] sm:$0xff] }
 0x203   : > { %v5377_v29 = vpack.c.bf16 %v838_v32, %v834_v8  ;;  %v5380_v42 = vpack.c.bf16 %v840_v34, %v836_v10  ;;  %v4306_v56 = vcombine.low %v1043_v40, %v1047_v41  ;;  %v4313_v57 = vcombine.high %v1050_v45, %v1054_v49  ;;  %v1070_v8 = vld [vmem:[#allocation2 + $0x6a0] sm:$0xff]  ;;  %v1071_v46 = vld [vmem:[#allocation2 + $0x6a8] sm:$0xff] }
 0x204   : > { %v5382_v37 = vpack.c.bf16 %v839_v35, %v835_v19  ;;  %2520 = vmatpush1.bf16.msra.mxu1 %v4288_v14  ;;  %2666 = vmatpush1.bf16.msra.mxu0 %v4290_v2  ;;  %v5384_v44 = vpack.c.bf16 %v841_v28, %v837_v24  ;;  %v4304_v14 = vcombine.low %v1042_v36, %v1046_v39  ;;  %v4888_v2 = vld [vmem:[%s5053_s30 + $0x8] sm:$0xff]  ;;  %v1078_v24 = vld [vmem:[#allocation2 + $0x6e0] sm:$0xff] }
 0x205   : > { %2521 = vmatprep.subr.bf16.mxu1 %v4297_v27  ;;  %2667 = vmatprep.subr.bf16.mxu0 %v4299_v33  ;;  %v4315_v58 = vcombine.high %v1051_v51, %v1055_v54  ;;  %v4312_v3 = vcombine.low %v1050_v45, %v1054_v49  ;;  %v4314_v4 = vcombine.low %v1051_v51, %v1055_v54  ;;  %v1075_v31 = vld [vmem:[#allocation2 + $0x6c8] sm:$0xff]  ;;  %v4889_v27 = vld [vmem:[%s5053_s30 + $0x10] sm:$0xff]  ;;  %v4890_v33 = vld [vmem:[%s5053_s30 + $0x18] sm:$0xff] }
 0x206   : > { %2498 = vmatprep.mubr.bf16.mxu1 %v5382_v37  ;;  %2644 = vmatprep.mubr.bf16.mxu0 %v5382_v37  ;;  %v4321_v5 = vcombine.high %v1058_v55, %v1062_v59  ;;  %v4323_v6 = vcombine.high %v1059_v62, %v1063_v63  ;;  %v4320_v10 = vcombine.low %v1058_v55, %v1062_v59  ;;  %v1079_v32 = vld [vmem:[#allocation2 + $0x6e8] sm:$0xff]  ;;  %v1094_v49 = vld [vmem:[#allocation2 + $0x760] sm:$0xff] }
 0x207   : > { %2499 = vmatmul.mubr.bf16.gmra.mrb[28].mxu1 %v5377_v29  ;;  %2645 = vmatmul.mubr.bf16.gmra.mrb[36].mxu0 %v5377_v29  ;;  %v4322_v11 = vcombine.low %v1059_v62, %v1063_v63  ;;  %v4329_v15 = vcombine.high %v1066_v7, %v1070_v8  ;;  %v4331_v19 = vcombine.high %v1067_v9, %v1071_v46  ;;  %v1083_v39 = vld [vmem:[#allocation2 + $0x708] sm:$0xff]  ;;  %v1098_v55 = vld [vmem:[#allocation2 + $0x780] sm:$0xff] }
 0x208   : > { %2522 = vmatpush1.bf16.msra.mxu1 %v4296_v30  ;;  %2668 = vmatpush1.bf16.msra.mxu0 %v4298_v43  ;;  %v4328_v34 = vcombine.low %v1066_v7, %v1070_v8  ;;  %v4330_v35 = vcombine.low %v1067_v9, %v1071_v46  ;;  %v4337_v36 = vcombine.high %v1074_v20, %v1078_v24  ;;  %v1086_v30 = vld [vmem:[#allocation2 + $0x720] sm:$0xff]  ;;  %v1087_v40 = vld [vmem:[#allocation2 + $0x728] sm:$0xff] }
 0x209   : > { %2541 = vmatprep.mubr.bf16.mxu1 %v5247_v1  ;;  %2687 = vmatprep.mubr.bf16.mxu0 %v5247_v1  ;;  %v4339_v28 = vcombine.high %v1075_v31, %v1079_v32  ;;  %v4336_v41 = vcombine.low %v1074_v20, %v1078_v24  ;;  %v4338_v43 = vcombine.low %v1075_v31, %v1079_v32  ;;  %v1091_v51 = vld [vmem:[#allocation2 + $0x748] sm:$0xff]  ;;  %v1102_v59 = vld [vmem:[#allocation2 + $0x7a0] sm:$0xff]  ;;  %v860_v24 = vld [vmem:[#allocation2 + $0x10] sm:$0xff] }
 0x20a   : > { %2523 = vmatprep.subr.bf16.mxu1 %v4305_v48  ;;  %2669 = vmatprep.subr.bf16.mxu0 %v4307_v12  ;;  %v4347_v48 = vcombine.high %v1083_v39, %v1087_v40  ;;  %v1090_v12 = vld [vmem:[#allocation2 + $0x740] sm:$0xff]  ;;  %v1095_v54 = vld [vmem:[#allocation2 + $0x768] sm:$0xff]  ;;  %v864_v31 = vld [vmem:[#allocation2 + $0x30] sm:$0xff] }
 0x20b   : > { %3030 = vrot.lane.b32.xlu0 %v4888_v2, %s4947_s9  ;;  %3054 = vrot.lane.b32.xlu1 %v4888_v2, %s4948_s11  ;;  %v1099_v62 = vld [vmem:[#allocation2 + $0x788] sm:$0xff]  ;;  %v1106_v8 = vld [vmem:[#allocation2 + $0x7c0] sm:$0xff]  ;;  %v861_v32 = vld [vmem:[#allocation2 + $0x18] sm:$0xff] }
 0x20c   : > { %2524 = vmatpush1.bf16.msra.mxu1 %v4304_v14  ;;  %2670 = vmatpush1.bf16.msra.mxu0 %v4306_v56  ;;  %v4346_v56 = vcombine.low %v1083_v39, %v1087_v40  ;;  %v1103_v63 = vld [vmem:[#allocation2 + $0x7a8] sm:$0xff]  ;;  %v1110_v9 = vld [vmem:[#allocation2 + $0x7e0] sm:$0xff]  ;;  %v873_v39 = vld [vmem:[#allocation2 + $0x78] sm:$0xff] }
 0x20d   : > { %2525 = vmatprep.subr.bf16.mxu1 %v4313_v57  ;;  %2671 = vmatprep.subr.bf16.mxu0 %v4315_v58  ;;  %v4353_v57 = vcombine.high %v1090_v12, %v1094_v49  ;;  %v4355_v58 = vcombine.high %v1091_v51, %v1095_v54  ;;  %v4363_v7 = vcombine.high %v1099_v62, %v1103_v63  ;;  %v1107_v46 = vld [vmem:[#allocation2 + $0x7c8] sm:$0xff]  ;;  %v4893_v40 = vld [vmem:[%s5053_s30 + $0x30] sm:$0xff] }
 0x20f   : > { %3076 = vrot.lane.b32.xlu0 %v4887_v38, %s4949_s28  ;;  %3078 = vrot.lane.b32.xlu1 %v4888_v2, %s4949_s28  ;;  %v1082_v38 = vld [vmem:[#allocation2 + $0x700] sm:$0xff] }
 0x210   : > { %2526 = vmatpush1.bf16.msra.mxu1 %v4312_v3  ;;  %2672 = vmatpush1.bf16.msra.mxu0 %v4314_v4  ;;  %v4345_v45 = vcombine.high %v1082_v38, %v1086_v30  ;;  %v4344_v14 = vcombine.low %v1082_v38, %v1086_v30  ;;  %v4891_v2 = vld [vmem:[%s5053_s30 + $0x20] sm:$0xff]  ;;  %v4892_v3 = vld [vmem:[%s5053_s30 + $0x28] sm:$0xff]  ;;  %v4352_v4 = vcombine.low %v1090_v12, %v1094_v49  ;;  %v872_v38 = vld [vmem:[#allocation2 + $0x70] sm:$0xff] }
 0x211   : > { %2527 = vmatprep.subr.bf16.mxu1 %v4321_v5  ;;  %2673 = vmatprep.subr.bf16.mxu0 %v4323_v6  ;;  %v4354_v5 = vcombine.low %v1091_v51, %v1095_v54  ;;  %v4361_v6 = vcombine.high %v1098_v55, %v1102_v59  ;;  %v869_v30 = vld [vmem:[#allocation2 + $0x58] sm:$0xff]  ;;  %v876_v49 = vld [vmem:[#allocation2 + $0x90] sm:$0xff] }
 0x212   : > { %v4135_v12 = vcombine.high %v869_v30, %v873_v39  ;;  %v880_v51 = vld [vmem:[#allocation2 + $0xb0] sm:$0xff]  ;;  %v877_v54 = vld [vmem:[#allocation2 + $0x98] sm:$0xff] }
 0x213   : > { %3032 = vrot.lane.b32.xlu0 %v4889_v27, %s4947_s9  ;;  %3034 = vrot.lane.b32.xlu1 %v4890_v33, %s4947_s9 }
 0x214   : > { %2528 = vmatpush1.bf16.msra.mxu1 %v4320_v10  ;;  %2674 = vmatpush1.bf16.msra.mxu0 %v4322_v11  ;;  %v1111_v10 = vld [vmem:[#allocation2 + $0x7e8] sm:$0xff]  ;;  %v4360_v11 = vcombine.low %v1098_v55, %v1102_v59  ;;  %v884_v59 = vld [vmem:[#allocation2 + $0xd0] sm:$0xff] }
 0x215   : > { %2529 = vmatprep.subr.bf16.mxu1 %v4329_v15  ;;  %2675 = vmatprep.subr.bf16.mxu0 %v4331_v19  ;;  %v4362_v15 = vcombine.low %v1099_v62, %v1103_v63  ;;  %v4369_v19 = vcombine.high %v1106_v8, %v1110_v9  ;;  %v4371_v20 = vcombine.high %v1107_v46, %v1111_v10  ;;  %v888_v62 = vld [vmem:[#allocation2 + $0xf0] sm:$0xff]  ;;  %v885_v63 = vld [vmem:[#allocation2 + $0xd8] sm:$0xff] }
 0x217   : > { %3056 = vrot.lane.b32.xlu0 %v4889_v27, %s4948_s11  ;;  %3058 = vrot.lane.b32.xlu1 %v4890_v33, %s4948_s11 }
 0x218   : > { %2530 = vmatpush1.bf16.msra.mxu1 %v4328_v34  ;;  %2676 = vmatpush1.bf16.msra.mxu0 %v4330_v35  ;;  %v4370_v34 = vcombine.low %v1107_v46, %v1111_v10  ;;  %v4125_v35 = vcombine.high %v860_v24, %v864_v31  ;;  %v897_v46 = vld [vmem:[#allocation2 + $0x138] sm:$0xff]  ;;  %v4148_v10 = vcombine.low %v884_v59, %v888_v62 }
 0x219   : > { %2531 = vmatprep.subr.bf16.mxu1 %v4337_v36  ;;  %2677 = vmatprep.subr.bf16.mxu0 %v4339_v28  ;;  %v868_v28 = vld [vmem:[#allocation2 + $0x50] sm:$0xff] }
 0x21b   : > { %3080 = vrot.lane.b32.xlu0 %v4889_v27, %s4949_s28  ;;  %3082 = vrot.lane.b32.xlu1 %v4890_v33, %s4949_s28  ;;  %v865_v27 = vld [vmem:[#allocation2 + $0x38] sm:$0xff]  ;;  %v4368_v33 = vcombine.low %v1106_v8, %v1110_v9  ;;  %v896_v8 = vld [vmem:[#allocation2 + $0x130] sm:$0xff] }
 0x21c   : > { %2532 = vmatpush1.bf16.msra.mxu1 %v4336_v41  ;;  %2678 = vmatpush1.bf16.msra.mxu0 %v4338_v43  ;;  %v4127_v36 = vcombine.high %v861_v32, %v865_v27  ;;  %v4894_v41 = vld [vmem:[%s5053_s30 + $0x38] sm:$0xff]  ;;  %v4124_v43 = vcombine.low %v860_v24, %v864_v31  ;;  %v904_v24 = vld [vmem:[#allocation2 + $0x170] sm:$0xff] }
 0x21d   : > { %2533 = vmatprep.subr.bf16.mxu1 %v4345_v45  ;;  %2679 = vmatprep.subr.bf16.mxu0 %v4347_v48  ;;  %v4126_v45 = vcombine.low %v861_v32, %v865_v27  ;;  %v4133_v48 = vcombine.high %v868_v28, %v872_v38  ;;  %v893_v9 = vld [vmem:[#allocation2 + $0x118] sm:$0xff] }
 0x21e   : > { %v901_v31 = vld [vmem:[#allocation2 + $0x158] sm:$0xff] }
 0x21f   : > { %3036 = vrot.lane.b32.xlu0 %v4891_v2, %s4947_s9  ;;  %3038 = vrot.lane.b32.xlu1 %v4892_v3, %s4947_s9  ;;  %v905_v32 = vld [vmem:[#allocation2 + $0x178] sm:$0xff] }
 0x220   : > { %2534 = vmatpush1.bf16.msra.mxu1 %v4344_v14  ;;  %2680 = vmatpush1.bf16.msra.mxu0 %v4346_v56  ;;  %v881_v14 = vld [vmem:[#allocation2 + $0xb8] sm:$0xff]  ;;  %v4132_v56 = vcombine.low %v868_v28, %v872_v38  ;;  %v912_v28 = vld [vmem:[#allocation2 + $0x1b0] sm:$0xff] }
 0x221   : > { %2535 = vmatprep.subr.bf16.mxu1 %v4353_v57  ;;  %2681 = vmatprep.subr.bf16.mxu0 %v4355_v58  ;;  %v4134_v57 = vcombine.low %v869_v30, %v873_v39  ;;  %v4141_v58 = vcombine.high %v876_v49, %v880_v51  ;;  %v4143_v55 = vcombine.high %v877_v54, %v881_v14  ;;  %v909_v38 = vld [vmem:[#allocation2 + $0x198] sm:$0xff] }
 0x222   : > { %v913_v30 = vld [vmem:[#allocation2 + $0x1b8] sm:$0xff] }
 0x223   : > { %3060 = vrot.lane.b32.xlu0 %v4891_v2, %s4948_s11  ;;  %3062 = vrot.lane.b32.xlu1 %v4892_v3, %s4948_s11 }
 0x224   : > { %2536 = vmatpush1.bf16.msra.mxu1 %v4352_v4  ;;  %2682 = vmatpush1.bf16.msra.mxu0 %v4354_v5  ;;  %v4142_v4 = vcombine.low %v877_v54, %v881_v14  ;;  %v4149_v5 = vcombine.high %v884_v59, %v888_v62  ;;  %v4174_v54 = vcombine.low %v909_v38, %v913_v30  ;;  %v929_v59 = vld [vmem:[#allocation2 + $0x238] sm:$0xff] }
 0x225   : > { %2537 = vmatprep.subr.bf16.mxu1 %v4361_v6  ;;  %2683 = vmatprep.subr.bf16.mxu0 %v4363_v7  ;;  %v892_v7 = vld [vmem:[#allocation2 + $0x110] sm:$0xff] }
 0x226   : > { %v4156_v27 = vcombine.low %v892_v7, %v896_v8 }
 0x227   : > { %3084 = vrot.lane.b32.xlu0 %v4891_v2, %s4949_s28  ;;  %3086 = vrot.lane.b32.xlu1 %v4892_v3, %s4949_s28  ;;  %v889_v2 = vld [vmem:[#allocation2 + $0xf8] sm:$0xff]  ;;  %v4140_v3 = vcombine.low %v876_v49, %v880_v51 }
 0x228   : > { %2538 = vmatpush1.bf16.msra.mxu1 %v4360_v11  ;;  %2684 = vmatpush1.bf16.msra.mxu0 %v4362_v15  ;;  %v4151_v6 = vcombine.high %v885_v63, %v889_v2  ;;  %v4150_v11 = vcombine.low %v885_v63, %v889_v2  ;;  %v4157_v15 = vcombine.high %v892_v7, %v896_v8  ;;  %v921_v49 = vld [vmem:[#allocation2 + $0x1f8] sm:$0xff] }
 0x229   : > { %2539 = vmatprep.subr.bf16.mxu1 %v4369_v19  ;;  %2685 = vmatprep.subr.bf16.mxu0 %v4371_v20  ;;  %v4159_v19 = vcombine.high %v893_v9, %v897_v46  ;;  %v900_v20 = vld [vmem:[#allocation2 + $0x150] sm:$0xff]  ;;  %v937_v7 = vld [vmem:[#allocation2 + $0x278] sm:$0xff] }
 0x22a   : > { %v4164_v39 = vcombine.low %v900_v20, %v904_v24 }
 0x22b   : > { %3040 = vrot.lane.b32.xlu0 %v4893_v40, %s4947_s9  ;;  %3042 = vrot.lane.b32.xlu1 %v4894_v41, %s4947_s9 }
 0x22c   : > { %2540 = vmatpush1.bf16.msra.mxu1 %v4368_v33  ;;  %2686 = vmatpush1.bf16.msra.mxu0 %v4370_v34  ;;  %v4158_v33 = vcombine.low %v893_v9, %v897_v46  ;;  %v4165_v34 = vcombine.high %v900_v20, %v904_v24 }
 0x22d   : > { %2728 = vmatprep.subr.bf16.mxu1 %v4125_v35  ;;  %2874 = vmatprep.subr.bf16.mxu0 %v4127_v36  ;;  %v4167_v35 = vcombine.high %v901_v31, %v905_v32  ;;  %v908_v36 = vld [vmem:[#allocation2 + $0x190] sm:$0xff] }
 0x22e   : > { %v4172_v51 = vcombine.low %v908_v36, %v912_v28 }
 0x22f   : > { %2542 = vmatmul.mubr.bf16.vlgmr.msra.gmra.mrb[16].mxu1 %v5239_v61  ;;  %2688 = vmatmul.mubr.bf16.vlgmr.msra.gmra.mrb[24].mxu0 %v5239_v61 }
 0x230   : > { %2551 = vmatprep.mubr.bf16.mxu1 %v5299_v53  ;;  %2697 = vmatprep.mubr.bf16.mxu0 %v5299_v53 }
 0x231   : > { %2729 = vmatpush1.bf16.msra.mxu1 %v4124_v43  ;;  %2875 = vmatpush1.bf16.msra.mxu0 %v4126_v45  ;;  %v4175_v43 = vcombine.high %v909_v38, %v913_v30  ;;  %v916_v45 = vld [vmem:[#allocation2 + $0x1d0] sm:$0xff] }
 0x232   : > { %2730 = vmatprep.subr.bf16.mxu1 %v4133_v48  ;;  %2876 = vmatprep.subr.bf16.mxu0 %v4135_v12  ;;  %v920_v48 = vld [vmem:[#allocation2 + $0x1f0] sm:$0xff]  ;;  %v917_v12 = vld [vmem:[#allocation2 + $0x1d8] sm:$0xff] }
 0x233   : > { %3064 = vrot.lane.b32.xlu0 %v4893_v40, %s4948_s11  ;;  %3066 = vrot.lane.b32.xlu1 %v4894_v41, %s4948_s11  ;;  %v4181_v14 = vcombine.high %v916_v45, %v920_v48  ;;  %v4180_v62 = vcombine.low %v916_v45, %v920_v48  ;;  %v4182_v63 = vcombine.low %v917_v12, %v921_v49 }
 0x235   : > { %2731 = vmatpush1.bf16.msra.mxu1 %v4132_v56  ;;  %2877 = vmatpush1.bf16.msra.mxu0 %v4134_v57  ;;  %v4183_v56 = vcombine.high %v917_v12, %v921_v49  ;;  %v924_v57 = vld [vmem:[#allocation2 + $0x210] sm:$0xff] }
 0x236   : > { %2732 = vmatprep.subr.bf16.mxu1 %v4141_v58  ;;  %2878 = vmatprep.subr.bf16.mxu0 %v4143_v55  ;;  %v928_v58 = vld [vmem:[#allocation2 + $0x230] sm:$0xff]  ;;  %v925_v55 = vld [vmem:[#allocation2 + $0x218] sm:$0xff] }
 0x237   : > { %2552 = vmatmul.mubr.bf16.gmra.mrb[20].mxu1 %v5291_v18  ;;  %2698 = vmatmul.mubr.bf16.gmra.mrb[28].mxu0 %v5291_v18  ;;  %v4189_v2 = vcombine.high %v924_v57, %v928_v58  ;;  %v4188_v8 = vcombine.low %v924_v57, %v928_v58  ;;  %v4190_v9 = vcombine.low %v925_v55, %v929_v59 }
 0x238   : > { %2561 = vmatprep.mubr.bf16.mxu1 %v5353_v50  ;;  %2707 = vmatprep.mubr.bf16.mxu0 %v5353_v50 }
 0x239   : > { %2733 = vmatpush1.bf16.msra.mxu1 %v4140_v3  ;;  %2879 = vmatpush1.bf16.msra.mxu0 %v4142_v4  ;;  %v4191_v3 = vcombine.high %v925_v55, %v929_v59  ;;  %v932_v4 = vld [vmem:[#allocation2 + $0x250] sm:$0xff] }
 0x23a   : > { %2734 = vmatprep.subr.bf16.mxu1 %v4149_v5  ;;  %2880 = vmatprep.subr.bf16.mxu0 %v4151_v6  ;;  %v936_v5 = vld [vmem:[#allocation2 + $0x270] sm:$0xff]  ;;  %v933_v6 = vld [vmem:[#allocation2 + $0x258] sm:$0xff] }
 0x23b   : > { %3088 = vrot.lane.b32.xlu0 %v4893_v40, %s4949_s28  ;;  %3090 = vrot.lane.b32.xlu1 %v4894_v41, %s4949_s28  ;;  %v4166_v40 = vcombine.low %v901_v31, %v905_v32  ;;  %v4173_v41 = vcombine.high %v908_v36, %v912_v28  ;;  %v4197_v46 = vcombine.high %v932_v4, %v936_v5 }
 0x23c   : > { %v4196_v20 = vcombine.low %v932_v4, %v936_v5  ;;  %v4198_v24 = vcombine.low %v933_v6, %v937_v7 }
 0x23d   : > { %2735 = vmatpush1.bf16.msra.mxu1 %v4148_v10  ;;  %2881 = vmatpush1.bf16.msra.mxu0 %v4150_v11  ;;  %v940_v10 = vld [vmem:[#allocation2 + $0x290] sm:$0xff] }
 0x23e   : > { %2736 = vmatprep.subr.bf16.mxu1 %v4157_v15  ;;  %2882 = vmatprep.subr.bf16.mxu0 %v4159_v19  ;;  %v944_v11 = vld [vmem:[#allocation2 + $0x2b0] sm:$0xff]  ;;  %v941_v15 = vld [vmem:[#allocation2 + $0x298] sm:$0xff] }
 0x23f   : > { %2562 = vmatmul.mubr.bf16.gmra.mrb[24].mxu1 %v5347_v13  ;;  %2708 = vmatmul.mubr.bf16.gmra.mrb[32].mxu0 %v5347_v13  ;;  %v945_v19 = vld [vmem:[#allocation2 + $0x2b8] sm:$0xff]  ;;  %v4205_v31 = vcombine.high %v940_v10, %v944_v11  ;;  %v4204_v36 = vcombine.low %v940_v10, %v944_v11 }
 0x240   : > { %2571 = vmatprep.mubr.bf16.mxu1 %v5384_v44  ;;  %2717 = vmatprep.mubr.bf16.mxu0 %v5384_v44  ;;  %v4207_v32 = vcombine.high %v941_v15, %v945_v19  ;;  %v4206_v28 = vcombine.low %v941_v15, %v945_v19 }
 0x241   : > { %2737 = vmatpush1.bf16.msra.mxu1 %v4156_v27  ;;  %2883 = vmatpush1.bf16.msra.mxu0 %v4158_v33  ;;  %v948_v27 = vld [vmem:[#allocation2 + $0x2d0] sm:$0xff] }
 0x242   : > { %2738 = vmatprep.subr.bf16.mxu1 %v4165_v34  ;;  %2884 = vmatprep.subr.bf16.mxu0 %v4167_v35  ;;  %v952_v33 = vld [vmem:[#allocation2 + $0x2f0] sm:$0xff]  ;;  %v949_v34 = vld [vmem:[#allocation2 + $0x2d8] sm:$0xff] }
 0x243   : > { %v953_v35 = vld [vmem:[#allocation2 + $0x2f8] sm:$0xff]  ;;  %v4213_v38 = vcombine.high %v948_v27, %v952_v33  ;;  %v4212_v45 = vcombine.low %v948_v27, %v952_v33 }
 0x244   : > { %v4215_v30 = vcombine.high %v949_v34, %v953_v35  ;;  %v4214_v48 = vcombine.low %v949_v34, %v953_v35 }
 0x245   : > { %2739 = vmatpush1.bf16.msra.mxu1 %v4164_v39  ;;  %2885 = vmatpush1.bf16.msra.mxu0 %v4166_v40  ;;  %v956_v39 = vld [vmem:[#allocation2 + $0x310] sm:$0xff] }
 0x246   : > { %2740 = vmatprep.subr.bf16.mxu1 %v4173_v41  ;;  %2886 = vmatprep.subr.bf16.mxu0 %v4175_v43  ;;  %v960_v40 = vld [vmem:[#allocation2 + $0x330] sm:$0xff]  ;;  %v957_v41 = vld [vmem:[#allocation2 + $0x318] sm:$0xff] }
 0x247   : > { %2572 = vmatmul.mubr.bf16.gmra.mrb[28].mxu1 %v5380_v42  ;;  %2718 = vmatmul.mubr.bf16.gmra.mrb[36].mxu0 %v5380_v42  ;;  %v961_v43 = vld [vmem:[#allocation2 + $0x338] sm:$0xff]  ;;  %v4221_v12 = vcombine.high %v956_v39, %v960_v40  ;;  %v4220_v57 = vcombine.low %v956_v39, %v960_v40 }
 0x248   : > { %2760 = vmatprep.mubr.bf16.mxu1 %v5245_v0  ;;  %2906 = vmatprep.mubr.bf16.mxu0 %v5245_v0  ;;  %v4199_v0 = vcombine.high %v933_v6, %v937_v7  ;;  %v4223_v49 = vcombine.high %v957_v41, %v961_v43  ;;  %v4222_v58 = vcombine.low %v957_v41, %v961_v43 }
 0x249   : > { %2741 = vmatpush1.bf16.msra.mxu1 %v4172_v51  ;;  %2887 = vmatpush1.bf16.msra.mxu0 %v4174_v54  ;;  %v964_v51 = vld [vmem:[#allocation2 + $0x350] sm:$0xff] }
 0x24a   : > { %2742 = vmatprep.subr.bf16.mxu1 %v4181_v14  ;;  %2888 = vmatprep.subr.bf16.mxu0 %v4183_v56  ;;  %v968_v54 = vld [vmem:[#allocation2 + $0x370] sm:$0xff]  ;;  %v965_v14 = vld [vmem:[#allocation2 + $0x358] sm:$0xff] }
 0x24b   : > { %v969_v56 = vld [vmem:[#allocation2 + $0x378] sm:$0xff]  ;;  %v4229_v55 = vcombine.high %v964_v51, %v968_v54  ;;  %v4228_v4 = vcombine.low %v964_v51, %v968_v54 }
 0x24c   : > { %v4231_v59 = vcombine.high %v965_v14, %v969_v56  ;;  %v4230_v5 = vcombine.low %v965_v14, %v969_v56 }
 0x24d   : > { %2743 = vmatpush1.bf16.msra.mxu1 %v4180_v62  ;;  %2889 = vmatpush1.bf16.msra.mxu0 %v4182_v63  ;;  %v972_v62 = vld [vmem:[#allocation2 + $0x390] sm:$0xff] }
 0x24e   : > { %2744 = vmatprep.subr.bf16.mxu1 %v4189_v2  ;;  %2890 = vmatprep.subr.bf16.mxu0 %v4191_v3  ;;  %v976_v63 = vld [vmem:[#allocation2 + $0x3b0] sm:$0xff]  ;;  %v973_v2 = vld [vmem:[#allocation2 + $0x398] sm:$0xff] }
 0x24f   : > { %v977_v3 = vld [vmem:[#allocation2 + $0x3b8] sm:$0xff]  ;;  %v4237_v6 = vcombine.high %v972_v62, %v976_v63  ;;  %v4236_v10 = vcombine.low %v972_v62, %v976_v63 }
 0x250   : > { %v4239_v7 = vcombine.high %v973_v2, %v977_v3  ;;  %v4238_v11 = vcombine.low %v973_v2, %v977_v3  ;;  %v1020_v3 = vld [vmem:[#allocation2 + $0x510] sm:$0xff] }
 0x251   : > { %2745 = vmatpush1.bf16.msra.mxu1 %v4188_v8  ;;  %2891 = vmatpush1.bf16.msra.mxu0 %v4190_v9  ;;  %v980_v8 = vld [vmem:[#allocation2 + $0x3d0] sm:$0xff] }
 0x252   : > { %2746 = vmatprep.subr.bf16.mxu1 %v4197_v46  ;;  %2892 = vmatprep.subr.bf16.mxu0 %v4199_v0  ;;  %v984_v9 = vld [vmem:[#allocation2 + $0x3f0] sm:$0xff]  ;;  %v981_v46 = vld [vmem:[#allocation2 + $0x3d8] sm:$0xff] }
 0x253   : > { %v985_v0 = vld [vmem:[#allocation2 + $0x3f8] sm:$0xff]  ;;  %v4245_v15 = vcombine.high %v980_v8, %v984_v9  ;;  %v4244_v27 = vcombine.low %v980_v8, %v984_v9 }
 0x254   : > { %v4247_v19 = vcombine.high %v981_v46, %v985_v0  ;;  %v4246_v33 = vcombine.low %v981_v46, %v985_v0  ;;  %v1028_v46 = vld [vmem:[#allocation2 + $0x550] sm:$0xff] }
 0x255   : > { %2747 = vmatpush1.bf16.msra.mxu1 %v4196_v20  ;;  %2893 = vmatpush1.bf16.msra.mxu0 %v4198_v24  ;;  %v988_v20 = vld [vmem:[#allocation2 + $0x410] sm:$0xff] }
 0x256   : > { %2748 = vmatprep.subr.bf16.mxu1 %v4205_v31  ;;  %2894 = vmatprep.subr.bf16.mxu0 %v4207_v32  ;;  %v992_v24 = vld [vmem:[#allocation2 + $0x430] sm:$0xff]  ;;  %v989_v31 = vld [vmem:[#allocation2 + $0x418] sm:$0xff] }
 0x257   : > { %v993_v32 = vld [vmem:[#allocation2 + $0x438] sm:$0xff]  ;;  %v4253_v34 = vcombine.high %v988_v20, %v992_v24  ;;  %v4252_v39 = vcombine.low %v988_v20, %v992_v24  ;;  %v1032_v0 = vld [vmem:[#allocation2 + $0x570] sm:$0xff] }
 0x258   : > { %v4255_v35 = vcombine.high %v989_v31, %v993_v32  ;;  %v4254_v40 = vcombine.low %v989_v31, %v993_v32  ;;  %v1036_v24 = vld [vmem:[#allocation2 + $0x590] sm:$0xff]  ;;  %v1037_v31 = vld [vmem:[#allocation2 + $0x598] sm:$0xff] }
 0x259   : > { %2749 = vmatpush1.bf16.msra.mxu1 %v4204_v36  ;;  %2895 = vmatpush1.bf16.msra.mxu0 %v4206_v28  ;;  %v996_v36 = vld [vmem:[#allocation2 + $0x450] sm:$0xff]  ;;  %v1041_v32 = vld [vmem:[#allocation2 + $0x5b8] sm:$0xff] }
 0x25a   : > { %2750 = vmatprep.subr.bf16.mxu1 %v4213_v38  ;;  %2896 = vmatprep.subr.bf16.mxu0 %v4215_v30  ;;  %v1000_v28 = vld [vmem:[#allocation2 + $0x470] sm:$0xff]  ;;  %v997_v38 = vld [vmem:[#allocation2 + $0x458] sm:$0xff] }
 0x25b   : > { %v1001_v30 = vld [vmem:[#allocation2 + $0x478] sm:$0xff]  ;;  %v4261_v41 = vcombine.high %v996_v36, %v1000_v28  ;;  %v4260_v51 = vcombine.low %v996_v36, %v1000_v28  ;;  %v1044_v36 = vld [vmem:[#allocation2 + $0x5d0] sm:$0xff] }
 0x25c   : > { %v4263_v43 = vcombine.high %v997_v38, %v1001_v30  ;;  %v4262_v54 = vcombine.low %v997_v38, %v1001_v30  ;;  %v1048_v28 = vld [vmem:[#allocation2 + $0x5f0] sm:$0xff]  ;;  %v1045_v38 = vld [vmem:[#allocation2 + $0x5d8] sm:$0xff] }
 0x25d   : > { %2751 = vmatpush1.bf16.msra.mxu1 %v4212_v45  ;;  %2897 = vmatpush1.bf16.msra.mxu0 %v4214_v48  ;;  %v1004_v45 = vld [vmem:[#allocation2 + $0x490] sm:$0xff]  ;;  %v1049_v30 = vld [vmem:[#allocation2 + $0x5f8] sm:$0xff] }
 0x25e   : > { %2752 = vmatprep.subr.bf16.mxu1 %v4221_v12  ;;  %2898 = vmatprep.subr.bf16.mxu0 %v4223_v49  ;;  %v1008_v48 = vld [vmem:[#allocation2 + $0x4b0] sm:$0xff]  ;;  %v1005_v12 = vld [vmem:[#allocation2 + $0x498] sm:$0xff] }
 0x25f   : > { %v1009_v49 = vld [vmem:[#allocation2 + $0x4b8] sm:$0xff]  ;;  %v4269_v14 = vcombine.high %v1004_v45, %v1008_v48 }
 0x260   : > { %v4271_v56 = vcombine.high %v1005_v12, %v1009_v49  ;;  %v4270_v62 = vcombine.low %v1005_v12, %v1009_v49  ;;  %v4308_v12 = vcombine.low %v1044_v36, %v1048_v28  ;;  %v4310_v49 = vcombine.low %v1045_v38, %v1049_v30 }
 0x261   : > { %2753 = vmatpush1.bf16.msra.mxu1 %v4220_v57  ;;  %2899 = vmatpush1.bf16.msra.mxu0 %v4222_v58  ;;  %v1012_v57 = vld [vmem:[#allocation2 + $0x4d0] sm:$0xff] }
 0x262   : > { %2754 = vmatprep.subr.bf16.mxu1 %v4229_v55  ;;  %2900 = vmatprep.subr.bf16.mxu0 %v4231_v59  ;;  %v1016_v58 = vld [vmem:[#allocation2 + $0x4f0] sm:$0xff]  ;;  %v1013_v55 = vld [vmem:[#allocation2 + $0x4d8] sm:$0xff] }
 0x263   : > { %v1017_v59 = vld [vmem:[#allocation2 + $0x4f8] sm:$0xff]  ;;  %v4277_v63 = vcombine.high %v1012_v57, %v1016_v58 }
 0x264   : > { %v4279_v2 = vcombine.high %v1013_v55, %v1017_v59 }
 0x265   : > { %2755 = vmatpush1.bf16.msra.mxu1 %v4228_v4  ;;  %2901 = vmatpush1.bf16.msra.mxu0 %v4230_v5  ;;  %v1021_v4 = vld [vmem:[#allocation2 + $0x518] sm:$0xff] }
 0x266   : > { %2756 = vmatprep.subr.bf16.mxu1 %v4237_v6  ;;  %2902 = vmatprep.subr.bf16.mxu0 %v4239_v7  ;;  %v1025_v5 = vld [vmem:[#allocation2 + $0x538] sm:$0xff]  ;;  %v4276_v6 = vcombine.low %v1012_v57, %v1016_v58  ;;  %v4278_v7 = vcombine.low %v1013_v55, %v1017_v59 }
 0x267   : > { %v4287_v9 = vcombine.high %v1021_v4, %v1025_v5  ;;  %v1061_v57 = vld [vmem:[#allocation2 + $0x658] sm:$0xff] }
 0x268   : > { %v1065_v58 = vld [vmem:[#allocation2 + $0x678] sm:$0xff] }
 0x269   : > { %2757 = vmatpush1.bf16.msra.mxu1 %v4236_v10  ;;  %2903 = vmatpush1.bf16.msra.mxu0 %v4238_v11  ;;  %v1029_v10 = vld [vmem:[#allocation2 + $0x558] sm:$0xff] }
 0x26a   : > { %2758 = vmatprep.subr.bf16.mxu1 %v4245_v15  ;;  %2904 = vmatprep.subr.bf16.mxu0 %v4247_v19  ;;  %v1033_v11 = vld [vmem:[#allocation2 + $0x578] sm:$0xff]  ;;  %v4286_v15 = vcombine.low %v1021_v4, %v1025_v5  ;;  %v4293_v19 = vcombine.high %v1028_v46, %v1032_v0 }
 0x26b   : > { %v4295_v20 = vcombine.high %v1029_v10, %v1033_v11 }
 0x26d   : > { %2759 = vmatpush1.bf16.msra.mxu1 %v4244_v27  ;;  %2905 = vmatpush1.bf16.msra.mxu0 %v4246_v33  ;;  %v4292_v27 = vcombine.low %v1028_v46, %v1032_v0  ;;  %v4294_v33 = vcombine.low %v1029_v10, %v1033_v11 }
 0x26e   : > { %2801 = vmatprep.subr.bf16.mxu1 %v4253_v34  ;;  %2947 = vmatprep.subr.bf16.mxu0 %v4255_v35  ;;  %v4303_v35 = vcombine.high %v1037_v31, %v1041_v32 }
 0x270   : > { %2761 = vmatmul.mubr.bf16.vlgmr.msra.gmra.mrb[32].mxu1 %v5237_v60  ;;  %2907 = vmatmul.mubr.bf16.vlgmr.msra.gmra.mrb[40].mxu0 %v5237_v60  ;;  %v4268_v60 = vcombine.low %v1004_v45, %v1008_v48  ;;  %v1053_v45 = vld [vmem:[#allocation2 + $0x618] sm:$0xff] }
 0x271   : > { %2770 = vmatprep.mubr.bf16.mxu1 %v5297_v52  ;;  %2802 = vmatpush1.bf16.msra.mxu1 %v4252_v39  ;;  %v4302_v39 = vcombine.low %v1037_v31, %v1041_v32  ;;  %v1057_v48 = vld [vmem:[#allocation2 + $0x638] sm:$0xff] }
 0x272   : > { %2916 = vmatprep.mubr.bf16.mxu0 %v5297_v52  ;;  %2948 = vmatpush1.bf16.msra.mxu0 %v4254_v40  ;;  %v1024_v52 = vld [vmem:[#allocation2 + $0x530] sm:$0xff]  ;;  %v4309_v40 = vcombine.high %v1044_v36, %v1048_v28  ;;  %v4318_v55 = vcombine.low %v1053_v45, %v1057_v48 }
 0x273   : > { %2803 = vmatprep.subr.bf16.mxu1 %v4261_v41  ;;  %2949 = vmatprep.subr.bf16.mxu0 %v4263_v43  ;;  %v4285_v8 = vcombine.high %v1020_v3, %v1024_v52  ;;  %v4311_v41 = vcombine.high %v1045_v38, %v1049_v30  ;;  %v1052_v43 = vld [vmem:[#allocation2 + $0x610] sm:$0xff] }
 0x275   : > { %2804 = vmatpush1.bf16.msra.mxu1 %v4260_v51 }
 0x276   : > { %2950 = vmatpush1.bf16.msra.mxu0 %v4262_v54  ;;  %2805 = vmatprep.subr.bf16.mxu1 %v4269_v14  ;;  %v4319_v54 = vcombine.high %v1053_v45, %v1057_v48  ;;  %v1060_v14 = vld [vmem:[#allocation2 + $0x650] sm:$0xff] }
 0x277   : > { %2951 = vmatprep.subr.bf16.mxu0 %v4271_v56  ;;  %v1064_v56 = vld [vmem:[#allocation2 + $0x670] sm:$0xff] }
 0x278   : > { %2771 = vmatmul.mubr.bf16.gmra.mrb[36].mxu1 %v5289_v16  ;;  %2917 = vmatmul.mubr.bf16.gmra.mrb[44].mxu0 %v5289_v16  ;;  %v4284_v16 = vcombine.low %v1020_v3, %v1024_v52  ;;  %v4325_v59 = vcombine.high %v1060_v14, %v1064_v56  ;;  %v4324_v3 = vcombine.low %v1060_v14, %v1064_v56 }
 0x279   : > { %2780 = vmatprep.mubr.bf16.mxu1 %v5349_v17  ;;  %2806 = vmatpush1.bf16.msra.mxu1 %v4268_v60  ;;  %v4327_v60 = vcombine.high %v1061_v57, %v1065_v58  ;;  %v4326_v52 = vcombine.low %v1061_v57, %v1065_v58 }
 0x27a   : > { %2926 = vmatprep.mubr.bf16.mxu0 %v5349_v17  ;;  %2952 = vmatpush1.bf16.msra.mxu0 %v4270_v62  ;;  %v1040_v17 = vld [vmem:[#allocation2 + $0x5b0] sm:$0xff] }
 0x27b   : > { %2807 = vmatprep.subr.bf16.mxu1 %v4277_v63  ;;  %2953 = vmatprep.subr.bf16.mxu0 %v4279_v2  ;;  %v4301_v34 = vcombine.high %v1036_v24, %v1040_v17  ;;  %v1068_v62 = vld [vmem:[#allocation2 + $0x690] sm:$0xff]  ;;  %v1073_v2 = vld [vmem:[#allocation2 + $0x6b8] sm:$0xff] }
 0x27c   : > { %v1072_v63 = vld [vmem:[#allocation2 + $0x6b0] sm:$0xff] }
 0x27d   : > { %2808 = vmatpush1.bf16.msra.mxu1 %v4276_v6  ;;  %v4333_v4 = vcombine.high %v1068_v62, %v1072_v63  ;;  %v1076_v6 = vld [vmem:[#allocation2 + $0x6d0] sm:$0xff]  ;;  %v4332_v46 = vcombine.low %v1068_v62, %v1072_v63  ;;  %v4825_v62 = vld [vmem:[%s5945_s7] sm:$0xff]  }
 0x27e   : > { %2954 = vmatpush1.bf16.msra.mxu0 %v4278_v7  ;;  %2809 = vmatprep.subr.bf16.mxu1 %v4285_v8  ;;  %v1080_v7 = vld [vmem:[#allocation2 + $0x6f0] sm:$0xff]  ;;  %v1077_v8 = vld [vmem:[#allocation2 + $0x6d8] sm:$0xff]  ;;  %v4826_v63 = vld [vmem:[%s5945_s7 + $0x80] sm:$0xff]  }
 0x27f   : > { %2955 = vmatprep.subr.bf16.mxu0 %v4287_v9  ;;  %v1081_v9 = vld [vmem:[#allocation2 + $0x6f8] sm:$0xff]  ;;  %v4341_v10 = vcombine.high %v1076_v6, %v1080_v7 }
 0x280   : > { %2781 = vmatmul.mubr.bf16.gmra.mrb[40].mxu1 %v5341_v47  ;;  %2927 = vmatmul.mubr.bf16.gmra.mrb[48].mxu0 %v5341_v47  ;;  %v4300_v47 = vcombine.low %v1036_v24, %v1040_v17  ;;  %v4343_v11 = vcombine.high %v1077_v8, %v1081_v9  ;;  %v4340_v24 = vcombine.low %v1076_v6, %v1080_v7  ;;  %v4835_v6 = vld [vmem:[%s5945_s7 + $0x58] sm:$0xff]  }
 0x281   : > { %2790 = vmatprep.mubr.bf16.mxu1 %v5382_v37  ;;  %2810 = vmatpush1.bf16.msra.mxu1 %v4284_v16  ;;  %v1084_v16 = vld [vmem:[#allocation2 + $0x710] sm:$0xff]  ;;  %v4342_v17 = vcombine.low %v1077_v8, %v1081_v9  ;;  %v4836_v7 = vld [vmem:[%s5945_s7 + $0xd8] sm:$0xff]  }
 0x282   : > { %2936 = vmatprep.mubr.bf16.mxu0 %v5382_v37  ;;  %2956 = vmatpush1.bf16.msra.mxu0 %v4286_v15  ;;  %v1056_v37 = vld [vmem:[#allocation2 + $0x630] sm:$0xff]  ;;  %v4837_v8 = vld [vmem:[%s5945_s7 + $0x18] sm:$0xff]  }
 0x283   : > { %2811 = vmatprep.subr.bf16.mxu1 %v4293_v19  ;;  %2957 = vmatprep.subr.bf16.mxu0 %v4295_v20  ;;  %v4317_v51 = vcombine.high %v1052_v43, %v1056_v37  ;;  %v1088_v15 = vld [vmem:[#allocation2 + $0x730] sm:$0xff]  ;;  %v1085_v19 = vld [vmem:[#allocation2 + $0x718] sm:$0xff] }
 0x284   : > { %v1089_v20 = vld [vmem:[#allocation2 + $0x738] sm:$0xff]  ;;  %v4349_v31 = vcombine.high %v1084_v16, %v1088_v15  ;;  %v4348_v36 = vcombine.low %v1084_v16, %v1088_v15  ;;  %v4845_v16 = vld [vmem:[%s5945_s7 + $0x28] sm:$0xff]  }
 0x285   : > { %2812 = vmatpush1.bf16.msra.mxu1 %v4292_v27  ;;  %v4351_v32 = vcombine.high %v1085_v19, %v1089_v20  ;;  %v1092_v27 = vld [vmem:[#allocation2 + $0x750] sm:$0xff]  ;;  %v4350_v28 = vcombine.low %v1085_v19, %v1089_v20  ;;  %v4838_v9 = vld [vmem:[%s5945_s7 + $0x98] sm:$0xff]   ;;  %v4846_v15 = vld [vmem:[%s5945_s7 + $0xa8] sm:$0xff]  }
 0x286   : > { %2958 = vmatpush1.bf16.msra.mxu0 %v4294_v33  ;;  %2813 = vmatprep.subr.bf16.mxu1 %v4301_v34  ;;  %v1096_v33 = vld [vmem:[#allocation2 + $0x770] sm:$0xff]  ;;  %v1093_v34 = vld [vmem:[#allocation2 + $0x758] sm:$0xff] }
 0x287   : > { %2959 = vmatprep.subr.bf16.mxu0 %v4303_v35  ;;  %v1097_v35 = vld [vmem:[#allocation2 + $0x778] sm:$0xff]  ;;  %v4357_v38 = vcombine.high %v1092_v27, %v1096_v33  ;;  %v4847_v19 = vld [vmem:[%s5945_s7 + $0x70] sm:$0xff]  }
 0x288   : > { %2791 = vmatmul.mubr.bf16.gmra.mrb[44].mxu1 %v5377_v29  ;;  %2937 = vmatmul.mubr.bf16.gmra.mrb[52].mxu0 %v5377_v29  ;;  %v4316_v29 = vcombine.low %v1052_v43, %v1056_v37  ;;  %v4359_v30 = vcombine.high %v1093_v34, %v1097_v35  ;;  %v4356_v43 = vcombine.low %v1092_v27, %v1096_v33  ;;  %v4850_v20 = vld [vmem:[%s5945_s7 + $0xb0] sm:$0xff]   ;;  %v4855_v27 = vld [vmem:[%s5945_s7 + $0x140] sm:$0xff]   ;;  %v3029_v33 = vpop.permute.xlu0 %3028 }
 0x289   : > { %2814 = vmatpush1.bf16.msra.mxu1 %v4300_v47  ;;  %2833 = vmatprep.mubr.bf16.mxu1 %v5247_v1  ;;  %v1100_v47 = vld [vmem:[#allocation2 + $0x790] sm:$0xff]  ;;  %v4358_v37 = vcombine.low %v1093_v34, %v1097_v35  ;;  %v3053_v34 = vpop.permute.xlu1 %3052 }
 0x28a   : > { %2960 = vmatpush1.bf16.msra.mxu0 %v4302_v39  ;;  %2979 = vmatprep.mubr.bf16.mxu0 %v5247_v1  ;;  %v1069_v1 = vld [vmem:[#allocation2 + $0x698] sm:$0xff]  ;;  %v1104_v39 = vld [vmem:[#allocation2 + $0x7b0] sm:$0xff] }
 0x28b   : > { %2815 = vmatprep.subr.bf16.mxu1 %v4309_v40  ;;  %2961 = vmatprep.subr.bf16.mxu0 %v4311_v41  ;;  %v4335_v5 = vcombine.high %v1069_v1, %v1073_v2  ;;  %v4334_v0 = vcombine.low %v1069_v1, %v1073_v2  ;;  %v1101_v40 = vld [vmem:[#allocation2 + $0x798] sm:$0xff]  ;;  %v4365_v45 = vcombine.high %v1100_v47, %v1104_v39  ;;  %v4827_v1 = vld [vmem:[%s5945_s7 + $0x48] sm:$0xff]  }
 0x28c   : > { %v1105_v41 = vld [vmem:[#allocation2 + $0x7b8] sm:$0xff]  ;;  %v4364_v14 = vcombine.low %v1100_v47, %v1104_v39  ;;  %v4828_v2 = vld [vmem:[%s5945_s7 + $0xc8] sm:$0xff]   ;;  %v3031_v35 = vpop.permute.xlu0 %3030 }
 0x28d   : > { %2816 = vmatpush1.bf16.msra.mxu1 %v4308_v12  ;;  %v4367_v48 = vcombine.high %v1101_v40, %v1105_v41  ;;  %v1108_v12 = vld [vmem:[#allocation2 + $0x7d0] sm:$0xff]  ;;  %v4366_v56 = vcombine.low %v1101_v40, %v1105_v41 }
 0x28e   : > { %2962 = vmatpush1.bf16.msra.mxu0 %v4310_v49  ;;  %2817 = vmatprep.subr.bf16.mxu1 %v4317_v51  ;;  %v1112_v49 = vld [vmem:[#allocation2 + $0x7f0] sm:$0xff]  ;;  %v1109_v51 = vld [vmem:[#allocation2 + $0x7d8] sm:$0xff] }
 0x28f   : > { %2963 = vmatprep.subr.bf16.mxu0 %v4319_v54  ;;  %v1113_v54 = vld [vmem:[#allocation2 + $0x7f8] sm:$0xff]  ;;  %v4373_v57 = vcombine.high %v1108_v12, %v1112_v49 }
 0x290   : > { %v4375_v58 = vcombine.high %v1109_v51, %v1113_v54 }
 0x291   : > { %2818 = vmatpush1.bf16.msra.mxu1 %v4316_v29  ;;  %v4372_v29 = vcombine.low %v1108_v12, %v1112_v49  ;;  %v5582_v49 = vld [vmem:[%s5944_s6] sm:$0xff] }
 0x292   : > { %2964 = vmatpush1.bf16.msra.mxu0 %v4318_v55  ;;  %2819 = vmatprep.subr.bf16.mxu1 %v4325_v59  ;;  %v4374_v55 = vcombine.low %v1109_v51, %v1113_v54  ;;  %v4823_v59 = vld [vmem:[%s5945_s7 + $0x40] sm:$0xff]  }
 0x293   : > { %2965 = vmatprep.subr.bf16.mxu0 %v4327_v60  ;;  %v4824_v60 = vld [vmem:[%s5945_s7 + $0xc0] sm:$0xff]  }
 0x294   : > { %v4895_v51 = vld [vmem:[%s5053_s30] sm:$0xff] }
 0x295   : > { %2820 = vmatpush1.bf16.msra.mxu1 %v4324_v3  ;;  %v4829_v3 = vld [vmem:[%s5945_s7 + $0x8] sm:$0xff]   ;;  %v3100_v54 = vsel %vm360_vm0, %v4895_v51, %v3029_v33 }
 0x296   : > { %2966 = vmatpush1.bf16.msra.mxu0 %v4326_v52  ;;  %2821 = vmatprep.subr.bf16.mxu1 %v4333_v4  ;;  %v4830_v52 = vld [vmem:[%s5945_s7 + $0x88] sm:$0xff]   ;;  %v4831_v4 = vld [vmem:[%s5945_s7 + $0x50] sm:$0xff]  }
 0x297   : > { %2967 = vmatprep.subr.bf16.mxu0 %v4335_v5  ;;  %v4834_v5 = vld [vmem:[%s5945_s7 + $0x90] sm:$0xff]  }
 0x299   : > { %2822 = vmatpush1.bf16.msra.mxu1 %v4332_v46  ;;  %v4839_v46 = vld [vmem:[%s5945_s7 + $0x60] sm:$0xff]  }
 0x29a   : > { %2968 = vmatpush1.bf16.msra.mxu0 %v4334_v0  ;;  %2823 = vmatprep.subr.bf16.mxu1 %v4341_v10  ;;  %v4842_v0 = vld [vmem:[%s5945_s7 + $0xa0] sm:$0xff]   ;;  %v4843_v10 = vld [vmem:[%s5945_s7 + $0x68] sm:$0xff]  }
 0x29b   : > { %2969 = vmatprep.subr.bf16.mxu0 %v4343_v11  ;;  %v4844_v11 = vld [vmem:[%s5945_s7 + $0xe8] sm:$0xff]  }
 0x29d   : > { %2824 = vmatpush1.bf16.msra.mxu1 %v4340_v24  ;;  %v4851_v24 = vld [vmem:[%s5945_s7 + $0x78] sm:$0xff]  }
 0x29e   : > { %2970 = vmatpush1.bf16.msra.mxu0 %v4342_v17  ;;  %2825 = vmatprep.subr.bf16.mxu1 %v4349_v31  ;;  %v4852_v17 = vld [vmem:[%s5945_s7 + $0xf8] sm:$0xff]  }
 0x29f   : > { %2971 = vmatprep.subr.bf16.mxu0 %v4351_v32  ;;  %v4853_v31 = vld [vmem:[%s5945_s7 + $0x38] sm:$0xff]  }
 0x2a0   : > { %v4854_v32 = vld [vmem:[%s5945_s7 + $0xb8] sm:$0xff]  }
 0x2a1   : > { %2826 = vmatpush1.bf16.msra.mxu1 %v4348_v36  ;;  %v3055_v36 = vpop.permute.xlu1 %3054 }
 0x2a2   : > { %2972 = vmatpush1.bf16.msra.mxu0 %v4350_v28  ;;  %2827 = vmatprep.subr.bf16.mxu1 %v4357_v38  ;;  %v3077_v28 = vpop.permute.xlu0 %3076 }
 0x2a3   : > { %2973 = vmatprep.subr.bf16.mxu0 %v4359_v30 }
 0x2a5   : > { %2828 = vmatpush1.bf16.msra.mxu1 %v4356_v43  ;;  %v3079_v38 = vpop.permute.xlu1 %3078 }
 0x2a6   : > { %2974 = vmatpush1.bf16.msra.mxu0 %v4358_v37  ;;  %2829 = vmatprep.subr.bf16.mxu1 %v4365_v45  ;;  %v3033_v30 = vpop.permute.xlu0 %3032 }
 0x2a7   : > { %2975 = vmatprep.subr.bf16.mxu0 %v4367_v48 }
 0x2a9   : > { %2830 = vmatpush1.bf16.msra.mxu1 %v4364_v14  ;;  %v3035_v47 = vpop.permute.xlu1 %3034  ;;  %v4896_v14 = vld [vmem:[%s5053_s30 + $0x8] sm:$0xff] }
 0x2aa   : > { %2976 = vmatpush1.bf16.msra.mxu0 %v4366_v56  ;;  %2831 = vmatprep.subr.bf16.mxu1 %v4373_v57  ;;  %v3057_v39 = vpop.permute.xlu0 %3056  ;;  %v3101_v56 = vsel %vm360_vm0, %v4896_v14, %v3031_v35  ;;  %v5591_v57 = vrot.slane %v5582_v49, %v486_v22  ;;  %v4899_v35 = vld [vmem:[%s5053_s30 + $0x20] sm:$0xff] }
 0x2ab   : > { %2977 = vmatprep.subr.bf16.mxu0 %v4375_v58  ;;  %v5596_v58 = vrot.slane %v5582_v49, %v494_v23  ;;  %v3110_v22 = vsel %vm3108_vm1, %v3101_v56, %v3055_v36  ;;  %v4856_v56 = vld [vmem:[%s5945_s7 + $0x100] sm:$0xff]  }
 0x2ad   : > { %2832 = vmatpush1.bf16.msra.mxu1 %v4372_v29  ;;  %v3059_v40 = vpop.permute.xlu1 %3058  ;;  %v5601_v29 = vrot.slane %v5582_v49, %v490_v25 }
 0x2ae   : > { %2978 = vmatpush1.bf16.msra.mxu0 %v4374_v55  ;;  %4448 = vmatprep.subr.bf16.mxu1 %v4823_v59  ;;  %v5569_v41 = vpop.permute.xlu0 %3080  ;;  %v5606_v55 = vrot.slane %v5582_v49, %v498_v26  ;;  %v3109_v59 = vsel %vm3108_vm1, %v3100_v54, %v3053_v34 }
 0x2af   : > { %4488 = vmatprep.subr.bf16.mxu0 %v4824_v60 }
 0x2b0   : > { %2834 = vmatmul.mubr.bf16.vlgmr.msra.gmra.mrb[32].mxu1 %v5239_v61 }
 0x2b1   : > { %2980 = vmatmul.mubr.bf16.vlgmr.msra.gmra.mrb[40].mxu0 %v5239_v61  ;;  %2843 = vmatprep.mubr.bf16.mxu1 %v5299_v53  ;;  %v4832_v61 = vld [vmem:[%s5945_s7 + $0xd0] sm:$0xff]   ;;  %v5571_v43 = vpop.permute.xlu1 %3082 }
 0x2b2   : > { %2989 = vmatprep.mubr.bf16.mxu0 %v5299_v53  ;;  %4449 = vmatpush3.bf16.msra.mxu1 %v4825_v62  ;;  %v4833_v53 = vld [vmem:[%s5945_s7 + $0x10] sm:$0xff]   ;;  %v3037_v37 = vpop.permute.xlu0 %3036 }
 0x2b3   : > { %4489 = vmatpush3.bf16.msra.mxu0 %v4826_v63  ;;  %4450 = vmatprep.subr.bf16.mxu1 %v4827_v1  ;;  %v4897_v1 = vld [vmem:[%s5053_s30 + $0x10] sm:$0xff]  ;;  %v3104_v36 = vsel %vm360_vm0, %v4899_v35, %v3037_v37  ;;  %v4858_v37 = vld [vmem:[%s5945_s7 + $0x180] sm:$0xff]  }
 0x2b4   : > { %4490 = vmatprep.subr.bf16.mxu0 %v4828_v2  ;;  %v3102_v25 = vsel %vm360_vm0, %v4897_v1, %v3033_v30  ;;  %v4859_v1 = vld [vmem:[%s5945_s7 + $0x148] sm:$0xff]  }
 0x2b5   : > { %v5573_v45 = vpop.permute.xlu1 %3038 }
 0x2b6   : > { %4451 = vmatpush3.bf16.msra.mxu1 %v4829_v3  ;;  %v5575_v48 = vpop.permute.xlu0 %3060 }
 0x2b7   : > { %4491 = vmatpush3.bf16.msra.mxu0 %v4830_v52  ;;  %4452 = vmatprep.subr.bf16.mxu1 %v4831_v4  ;;  %v5619_v4 = vsel %vm3117_vm2, %v3109_v59, %v3077_v28 }
 0x2b8   : > { %2844 = vmatmul.mubr.bf16.gmra.mrb[36].mxu1 %v5291_v18  ;;  %4492 = vmatprep.subr.bf16.mxu0 %v4832_v61  ;;  %v5622_v61 = vsel %vm3117_vm2, %v3110_v22, %v3079_v38 }
 0x2b9   : > { %2990 = vmatmul.mubr.bf16.gmra.mrb[44].mxu0 %v5291_v18  ;;  %2853 = vmatprep.mubr.bf16.mxu1 %v5353_v50  ;;  %v4840_v18 = vld [vmem:[%s5945_s7 + $0xe0] sm:$0xff]   ;;  %v5577_v12 = vpop.permute.xlu1 %3062 }
 0x2ba   : > { %2999 = vmatprep.mubr.bf16.mxu0 %v5353_v50  ;;  %4453 = vmatpush3.bf16.msra.mxu1 %v4833_v53  ;;  %v4841_v50 = vld [vmem:[%s5945_s7 + $0x20] sm:$0xff]   ;;  %v5610_v60 = vpop.permute.xlu0 %3084 }
 0x2bb   : > { %4493 = vmatpush3.bf16.msra.mxu0 %v4834_v5  ;;  %4454 = vmatprep.subr.bf16.mxu1 %v4835_v6 }
 0x2bc   : > { %4494 = vmatprep.subr.bf16.mxu0 %v4836_v7 }
 0x2bd   : > { %v5612_v62 = vpop.permute.xlu1 %3086 }
 0x2be   : > { %4455 = vmatpush3.bf16.msra.mxu1 %v4837_v8  ;;  %v3041_v33 = vpop.permute.xlu0 %3040 }
 0x2bf   : > { %4495 = vmatpush3.bf16.msra.mxu0 %v4838_v9  ;;  %4456 = vmatprep.subr.bf16.mxu1 %v4839_v46 }
 0x2c0   : > { %2854 = vmatmul.mubr.bf16.gmra.mrb[40].mxu1 %v5347_v13  ;;  %4496 = vmatprep.subr.bf16.mxu0 %v4840_v18 }
 0x2c1   : > { %3000 = vmatmul.mubr.bf16.gmra.mrb[48].mxu0 %v5347_v13  ;;  %2863 = vmatprep.mubr.bf16.mxu1 %v5384_v44  ;;  %v4848_v13 = vld [vmem:[%s5945_s7 + $0xf0] sm:$0xff]   ;;  %v5642_v34 = vpop.permute.xlu1 %3042 }
 0x2c2   : > { %3009 = vmatprep.mubr.bf16.mxu0 %v5384_v44  ;;  %4457 = vmatpush3.bf16.msra.mxu1 %v4841_v50  ;;  %v4849_v44 = vld [vmem:[%s5945_s7 + $0x30] sm:$0xff]   ;;  %v4898_v50 = vld [vmem:[%s5053_s30 + $0x18] sm:$0xff] }
 0x2c3   : > { %4497 = vmatpush3.bf16.msra.mxu0 %v4842_v0  ;;  %4458 = vmatprep.subr.bf16.mxu1 %v4843_v10  ;;  %v3103_v0 = vsel %vm360_vm0, %v4898_v50, %v3035_v47  ;;  %v3111_v10 = vsel %vm3108_vm1, %v3102_v25, %v3057_v39  ;;  %v4861_v25 = vld [vmem:[%s5945_s7 + $0x1c8] sm:$0xff]  }
 0x2c4   : > { %4498 = vmatprep.subr.bf16.mxu0 %v4844_v11  ;;  %v5648_v39 = vsel %vm3117_vm2, %v3111_v10, %v5569_v41  ;;  %v4862_v50 = vld [vmem:[%s5945_s7 + $0x188] sm:$0xff]  }
 0x2c6   : > { %4459 = vmatpush3.bf16.msra.mxu1 %v4845_v16 }
 0x2c7   : > { %4499 = vmatpush3.bf16.msra.mxu0 %v4846_v15  ;;  %4460 = vmatprep.subr.bf16.mxu1 %v4847_v19 }
 0x2c8   : > { %2864 = vmatmul.mubr.bf16.gmra.mrb[44].mxu1 %v5380_v42  ;;  %4500 = vmatprep.subr.bf16.mxu0 %v4848_v13 }
 0x2c9   : > { %3010 = vmatmul.mubr.bf16.gmra.mrb[52].mxu0 %v5380_v42  ;;  %v4857_v42 = vld [vmem:[%s5945_s7 + $0x1c0] sm:$0xff]  }
 0x2ca   : > { %4461 = vmatpush3.bf16.msra.mxu1 %v4849_v44 }
 0x2cb   : > { %4501 = vmatpush3.bf16.msra.mxu0 %v4850_v20  ;;  %4462 = vmatprep.subr.bf16.mxu1 %v4851_v24 }
 0x2cc   : > { %4502 = vmatprep.subr.bf16.mxu0 %v4852_v17 }
 0x2ce   : > { %4463 = vmatpush3.bf16.msra.mxu1 %v4853_v31 }
 0x2cf   : > { %4503 = vmatpush3.bf16.msra.mxu0 %v4854_v32  ;;  %4528 = vmatprep.subr.bf16.mxu1 %v4855_v27  ;;  %v3112_v32 = vsel %vm3108_vm1, %v3103_v0, %v3059_v40 }
 0x2d0   : > { %4568 = vmatprep.subr.bf16.mxu0 %v4857_v42  ;;  %v5660_v59 = vsel %vm3117_vm2, %v3112_v32, %v5571_v43 }
 0x302   : > { %v2543_v23 = vpop.f32.mrb[16].mxu1  ;;  %v2689_v63 = vpop.f32.mrb[24].mxu0 }
 0x303   : > { %v4620_v2 = vadd.f32 %v2543_v23, %v5591_v57  ;;  %v4636_v26 = vadd.f32 %v2689_v63, %v5596_v58  ;;  %v2545_v3 = vpop.f32.mrb[17].mxu1  ;;  %v2691_v52 = vpop.f32.mrb[25].mxu0 }
 0x304   : > { %v4621_v53 = vadd.f32 %v2545_v3, %v5601_v29  ;;  %v4637_v5 = vadd.f32 %v2691_v52, %v5606_v55  ;;  %v2547_v6 = vpop.f32.mrb[18].mxu1  ;;  %v2693_v7 = vpop.f32.mrb[26].mxu0 }
 0x305   : > { %v4622_v8 = vadd.f32 %v2547_v6, %v5591_v57  ;;  %v4638_v9 = vadd.f32 %v2693_v7, %v5596_v58  ;;  %v2549_v46 = vpop.f32.mrb[19].mxu1  ;;  %v2695_v18 = vpop.f32.mrb[27].mxu0  ;;  %v3126_v15 = vmul.f32 %v4620_v2, %v5619_v4  ;;  %v3128_v19 = vmul.f32 %v4636_v26, %v5619_v4  ;;  %v4900_v2 = vld [vmem:[%s5053_s30 + $0x28] sm:$0xff] }
 0x306   : > { %v4623_v11 = vadd.f32 %v2549_v46, %v5601_v29  ;;  %v4639_v16 = vadd.f32 %v2695_v18, %v5606_v55  ;;  %v3127_v20 = vmul.f32 %v4621_v53, %v5619_v4  ;;  %v3129_v24 = vmul.f32 %v4637_v5, %v5619_v4  ;;  %v4860_v18 = vld [vmem:[%s5945_s7 + $0x108] sm:$0xff]  }
 0x307   : > { %v3134_v13 = vmul.f32 %v4622_v8, %v5622_v61  ;;  %v3136_v44 = vmul.f32 %v4638_v9, %v5622_v61  ;;  %v3105_v43 = vsel %vm360_vm0, %v4900_v2, %v5573_v45  ;;  %v3113_v26 = vsel %vm3108_vm1, %v3104_v36, %v5575_v48 }
 0x308   : > { %v3135_v17 = vmul.f32 %v4623_v11, %v5622_v61  ;;  %v3137_v31 = vmul.f32 %v4639_v16, %v5622_v61  ;;  %v3114_v16 = vsel %vm3108_vm1, %v3105_v43, %v5577_v12 }
 0x309   : > { %v3190_v27 = vpack.c.bf16 %v3134_v13, %v3126_v15  ;;  %v3192_v42 = vpack.c.bf16 %v3136_v44, %v3128_v19  ;;  %v3065_v13 = vpop.permute.xlu0 %3064  ;;  %v3067_v44 = vpop.permute.xlu1 %3066 }
 0x30a   : > { %v2553_v28 = vpop.f32.mrb[20].mxu1  ;;  %v2699_v38 = vpop.f32.mrb[28].mxu0  ;;  %v3191_v30 = vpack.c.bf16 %v3135_v17, %v3127_v20  ;;  %v3193_v47 = vpack.c.bf16 %v3137_v31, %v3129_v24  ;;  %v4901_v17 = vld [vmem:[%s5053_s30 + $0x30] sm:$0xff] }
 0x30b   : > { %v4624_v51 = vadd.f32 %v2553_v28, %v5591_v57  ;;  %v4640_v40 = vadd.f32 %v2699_v38, %v5596_v58  ;;  %v2555_v54 = vpop.f32.mrb[21].mxu1  ;;  %v2701_v14 = vpop.f32.mrb[29].mxu0  ;;  %v3106_v31 = vsel %vm360_vm0, %v4901_v17, %v3041_v33  ;;  %v4863_v38 = vld [vmem:[%s5945_s7 + $0x150] sm:$0xff]  }
 0x30c   : > { %v4625_v41 = vadd.f32 %v2555_v54, %v5601_v29  ;;  %v4641_v22 = vadd.f32 %v2701_v14, %v5606_v55  ;;  %v2557_v23 = vpop.f32.mrb[22].mxu1  ;;  %v2703_v63 = vpop.f32.mrb[30].mxu0  ;;  %3766 = vmatprep.mubr.bf16.mxu1 %v3191_v30  ;;  %3831 = vmatprep.mubr.bf16.mxu0 %v3193_v47  ;;  %v4865_v33 = vld [vmem:[%s5945_s7 + $0x1d0] sm:$0xff]  }
 0x30d   : > { %v4626_v3 = vadd.f32 %v2557_v23, %v5591_v57  ;;  %v4642_v52 = vadd.f32 %v2703_v63, %v5596_v58  ;;  %v2559_v53 = vpop.f32.mrb[23].mxu1  ;;  %v2705_v5 = vpop.f32.mrb[31].mxu0  ;;  %3767 = vmatmul.mubr.bf16.vlgmr.msra.gmra.mrb[48].mxu1 %v3190_v27  ;;  %v3142_v6 = vmul.f32 %v4624_v51, %v5648_v39  ;;  %v3144_v7 = vmul.f32 %v4640_v40, %v5648_v39  ;;  %v4864_v54 = vld [vmem:[%s5945_s7 + $0x110] sm:$0xff]  }
 0x30e   : > { %v4627_v8 = vadd.f32 %v2559_v53, %v5601_v29  ;;  %v4643_v9 = vadd.f32 %v2705_v5, %v5606_v55  ;;  %3832 = vmatmul.mubr.bf16.vlgmr.msra.gmra.mrb[56].mxu0 %v3192_v42  ;;  %v3143_v45 = vmul.f32 %v4625_v41, %v5648_v39  ;;  %4529 = vmatpush3.bf16.msra.mxu1 %v4856_v56  ;;  %v4866_v14 = vld [vmem:[%s5945_s7 + $0x190] sm:$0xff]  }
 0x30f   : > { %v3150_v48 = vmul.f32 %v4626_v3, %v5660_v59  ;;  %v3152_v46 = vmul.f32 %v4642_v52, %v5660_v59  ;;  %4569 = vmatpush3.bf16.msra.mxu0 %v4858_v37  ;;  %v3145_v0 = vmul.f32 %v4641_v22, %v5648_v39  ;;  %4530 = vmatprep.subr.bf16.mxu1 %v4859_v1  ;;  %v4902_v37 = vld [vmem:[%s5053_s30 + $0x38] sm:$0xff]  ;;  %s5913_s30 = scalar_lea.vmem %s5946_s8, %s4078_s25 }
 0x310   : > { %v3151_v10 = vmul.f32 %v4627_v8, %v5660_v59  ;;  %v3153_v11 = vmul.f32 %v4643_v9, %v5660_v59  ;;  %4570 = vmatprep.subr.bf16.mxu0 %v4861_v25  ;;  %v5699_v42 = vsel %vm3117_vm2, %v3113_v26, %v5610_v60  ;;  %v5711_v60 = vsel %vm3117_vm2, %v3114_v16, %v5612_v62  ;;  %v4867_v1 = vld [vmem:[%s5945_s7 + $0x158] sm:$0xff]   ;;  %v3089_v8 = vpop.permute.xlu0 %3088 }
 0x311   : > { %v3198_v15 = vpack.c.bf16 %v3150_v48, %v3142_v6  ;;  %v3200_v19 = vpack.c.bf16 %v3152_v46, %v3144_v7  ;;  %v3107_v41 = vsel %vm360_vm0, %v4902_v37, %v5642_v34  ;;  %v3115_v63 = vsel %vm3108_vm1, %v3106_v31, %v3065_v13  ;;  %v4869_v25 = vld [vmem:[%s5945_s7 + $0x1d8] sm:$0xff]  }
 0x312   : > { %v2563_v20 = vpop.f32.mrb[24].mxu1  ;;  %v2709_v24 = vpop.f32.mrb[32].mxu0  ;;  %v3199_v32 = vpack.c.bf16 %v3151_v10, %v3143_v45  ;;  %v3201_v27 = vpack.c.bf16 %v3153_v11, %v3145_v0  ;;  %4531 = vmatpush3.bf16.msra.mxu1 %v4860_v18  ;;  %v3116_v9 = vsel %vm3108_vm1, %v3107_v41, %v3067_v44  ;;  %v4868_v44 = vld [vmem:[%s5945_s7 + $0x118] sm:$0xff]  }
 0x313   : > { %v4628_v35 = vadd.f32 %v2563_v20, %v5591_v57  ;;  %v4644_v36 = vadd.f32 %v2709_v24, %v5596_v58  ;;  %v2565_v12 = vpop.f32.mrb[25].mxu1  ;;  %v2711_v28 = vpop.f32.mrb[33].mxu0  ;;  %4571 = vmatpush3.bf16.msra.mxu0 %v4862_v50  ;;  %4532 = vmatprep.subr.bf16.mxu1 %v4863_v38  ;;  %v4870_v20 = vld [vmem:[%s5945_s7 + $0x198] sm:$0xff]  }
 0x314   : > { %v4629_v30 = vadd.f32 %v2565_v12, %v5601_v29  ;;  %v4645_v47 = vadd.f32 %v2711_v28, %v5606_v55  ;;  %v2567_v51 = vpop.f32.mrb[26].mxu1  ;;  %v2713_v40 = vpop.f32.mrb[34].mxu0  ;;  %3774 = vmatprep.mubr.bf16.mxu1 %v3199_v32  ;;  %3839 = vmatprep.mubr.bf16.mxu0 %v3201_v27 }
 0x315   : > { %v4630_v56 = vadd.f32 %v2567_v51, %v5591_v57  ;;  %v4646_v62 = vadd.f32 %v2713_v40, %v5596_v58  ;;  %v2569_v22 = vpop.f32.mrb[27].mxu1  ;;  %v2715_v23 = vpop.f32.mrb[35].mxu0  ;;  %3775 = vmatmul.mubr.bf16.gmra.mrb[52].mxu1 %v3198_v15  ;;  %v3158_v2 = vmul.f32 %v4628_v35, %v5699_v42  ;;  %v3160_v43 = vmul.f32 %v4644_v36, %v5699_v42  ;;  %v4871_v35 = vld [vmem:[%s5945_s7 + $0x160] sm:$0xff]  }
 0x316   : > { %v4631_v26 = vadd.f32 %v2569_v22, %v5601_v29  ;;  %v4647_v34 = vadd.f32 %v2715_v23, %v5606_v55  ;;  %3840 = vmatmul.mubr.bf16.gmra.mrb[60].mxu0 %v3200_v19  ;;  %v3159_v3 = vmul.f32 %v4629_v30, %v5699_v42  ;;  %4572 = vmatprep.subr.bf16.mxu0 %v4865_v33  ;;  %v3091_v45 = vpop.permute.xlu1 %3090  ;;  %v4873_v36 = vld [vmem:[%s5945_s7 + $0x1e0] sm:$0xff]   ;;  %v4875_v22 = vld [vmem:[%s5945_s7 + $0x168] sm:$0xff]  }
 0x317   : > { %v3166_v52 = vmul.f32 %v4630_v56, %v5711_v60  ;;  %v3168_v53 = vmul.f32 %v4646_v62, %v5711_v60  ;;  %v3161_v5 = vmul.f32 %v4645_v47, %v5699_v42  ;;  %4533 = vmatpush3.bf16.msra.mxu1 %v4864_v54  ;;  %4573 = vmatpush3.bf16.msra.mxu0 %v4866_v14 }
 0x318   : > { %v3167_v6 = vmul.f32 %v4631_v26, %v5711_v60  ;;  %v3169_v7 = vmul.f32 %v4647_v34, %v5711_v60  ;;  %4534 = vmatprep.subr.bf16.mxu1 %v4867_v1  ;;  %4574 = vmatprep.subr.bf16.mxu0 %v4869_v25  ;;  %v5747_v15 = vsel %vm3117_vm2, %v3115_v63, %v3089_v8  ;;  %v4877_v1 = vld [vmem:[%s5945_s7 + $0x1e8] sm:$0xff]   ;;  %v4881_v26 = vld [vmem:[%s5945_s7 + $0x1f0] sm:$0xff]   ;;  %v1142_v8 = vsub.s32 6, %v5200_v21 }
 0x319   : > { %v3206_v48 = vpack.c.bf16 %v3166_v52, %v3158_v2  ;;  %v3208_v46 = vpack.c.bf16 %v3168_v53, %v3160_v43  ;;  %v5758_v27 = vsel %vm3117_vm2, %v3116_v9, %v3091_v45  ;;  %v4876_v25 = vld [vmem:[%s5945_s7 + $0x128] sm:$0xff]   ;;  %v4879_v43 = vld [vmem:[%s5945_s7 + $0x170] sm:$0xff]   ;;  %v4883_v52 = vld [vmem:[%s5945_s7 + $0x178] sm:$0xff]   ;;  %v1138_v9 = vsub.s32 5, %v5200_v21 }
 0x31a   : > { %v2573_v18 = vpop.f32.mrb[28].mxu1  ;;  %v2719_v50 = vpop.f32.mrb[36].mxu0  ;;  %v3207_v0 = vpack.c.bf16 %v3167_v6, %v3159_v3  ;;  %v3209_v10 = vpack.c.bf16 %v3169_v7, %v3161_v5  ;;  %v4878_v2 = vld [vmem:[%s5945_s7 + $0x1a8] sm:$0xff]   ;;  %v4880_v34 = vld [vmem:[%s5945_s7 + $0x130] sm:$0xff]   ;;  %v4885_v53 = vld [vmem:[%s5945_s7 + $0x1f8] sm:$0xff]   ;;  %v1134_v7 = vsub.s32 4, %v5200_v21 }
 0x31b   : > { %v4632_v11 = vadd.f32 %v2573_v18, %v5591_v57  ;;  %v4648_v16 = vadd.f32 %v2719_v50, %v5596_v58  ;;  %v2575_v19 = vpop.f32.mrb[29].mxu1  ;;  %v2721_v13 = vpop.f32.mrb[37].mxu0  ;;  %4535 = vmatpush3.bf16.msra.mxu1 %v4868_v44  ;;  %4575 = vmatpush3.bf16.msra.mxu0 %v4870_v20  ;;  %v4882_v3 = vld [vmem:[%s5945_s7 + $0x1b0] sm:$0xff]   ;;  %v4884_v5 = vld [vmem:[%s5945_s7 + $0x138] sm:$0xff]   ;;  %v1146_v45 = vsub.s32 7, %v5200_v21  ;;  %v5831_v18 = vrot.slane %v5582_v49, %v1138_v9 }
 0x31c   : > { %v4633_v24 = vadd.f32 %v2575_v19, %v5601_v29  ;;  %v4649_v17 = vadd.f32 %v2721_v13, %v5606_v55  ;;  %v2577_v31 = vpop.f32.mrb[30].mxu1  ;;  %v2723_v32 = vpop.f32.mrb[38].mxu0  ;;  %3782 = vmatprep.mubr.bf16.mxu1 %v3207_v0  ;;  %3847 = vmatprep.mubr.bf16.mxu0 %v3209_v10  ;;  %v4886_v6 = vld [vmem:[%s5945_s7 + $0x1b8] sm:$0xff]  }
 0x31d   : > { %v4634_v12 = vadd.f32 %v2577_v31, %v5591_v57  ;;  %v4650_v28 = vadd.f32 %v2723_v32, %v5596_v58  ;;  %v2579_v38 = vpop.f32.mrb[31].mxu1  ;;  %v2725_v33 = vpop.f32.mrb[39].mxu0  ;;  %3783 = vmatmul.mubr.bf16.gmra.mrb[56].mxu1 %v3206_v48  ;;  %v3174_v51 = vmul.f32 %v4632_v11, %v5747_v15  ;;  %v3176_v40 = vmul.f32 %v4648_v16, %v5747_v15  ;;  %v4872_v58 = vld [vmem:[%s5945_s7 + $0x120] sm:$0xff]  }
 0x31e   : > { %v4635_v30 = vadd.f32 %v2579_v38, %v5601_v29  ;;  %v4651_v47 = vadd.f32 %v2725_v33, %v5606_v55  ;;  %3848 = vmatmul.mubr.bf16.gmra.mrb[64].mxu0 %v3208_v46  ;;  %v3175_v54 = vmul.f32 %v4633_v24, %v5747_v15  ;;  %v4874_v29 = vld [vmem:[%s5945_s7 + $0x1a0] sm:$0xff]   ;;  %v3177_v55 = vmul.f32 %v4649_v17, %v5747_v15 }
 0x31f   : > { %v3182_v14 = vmul.f32 %v4634_v12, %v5758_v27  ;;  %v3184_v57 = vmul.f32 %v4650_v28, %v5758_v27  ;;  %4536 = vmatprep.subr.bf16.mxu1 %v4871_v35  ;;  %4576 = vmatprep.subr.bf16.mxu0 %v4873_v36  ;;  %v5825_v48 = vrot.slane %v5582_v49, %v1134_v7 }
 0x320   : > { %v3183_v56 = vmul.f32 %v4635_v30, %v5758_v27  ;;  %v3185_v62 = vmul.f32 %v4651_v47, %v5758_v27  ;;  %4537 = vmatpush3.bf16.msra.mxu1 %v4872_v58  ;;  %4577 = vmatpush3.bf16.msra.mxu0 %v4874_v29  ;;  %v5828_v46 = vrot.slane %v5582_v49, %v1142_v8 }
 0x321   : > { %v3214_v37 = vpack.c.bf16 %v3182_v14, %v3174_v51  ;;  %v3216_v41 = vpack.c.bf16 %v3184_v57, %v3176_v40  ;;  %4538 = vmatprep.subr.bf16.mxu1 %v4875_v22  ;;  %4578 = vmatprep.subr.bf16.mxu0 %v4877_v1  ;;  %v5834_v50 = vrot.slane %v5582_v49, %v1146_v45 }
 0x322   : > { %v3215_v23 = vpack.c.bf16 %v3183_v56, %v3175_v54  ;;  %v3217_v63 = vpack.c.bf16 %v3185_v62, %v3177_v55 }
 0x324   : > { %3790 = vmatprep.mubr.bf16.mxu1 %v3215_v23  ;;  %3855 = vmatprep.mubr.bf16.mxu0 %v3217_v63 }
 0x325   : > { %3791 = vmatmul.mubr.bf16.gmra.mrb[60].mxu1 %v3214_v37  ;;  %4579 = vmatpush3.bf16.msra.mxu0 %v4878_v2 }
 0x326   : > { %3856 = vmatmul.mubr.bf16.gmra.mrb[68].mxu0 %v3216_v41  ;;  %4539 = vmatpush3.bf16.msra.mxu1 %v4876_v25 }
 0x327   : > { %4540 = vmatprep.subr.bf16.mxu1 %v4879_v43  ;;  %4580 = vmatprep.subr.bf16.mxu0 %v4881_v26 }
 0x329   : > { %4581 = vmatpush3.bf16.msra.mxu0 %v4882_v3 }
 0x32a   : > { %4541 = vmatpush3.bf16.msra.mxu1 %v4880_v34  ;;  %4582 = vmatprep.subr.bf16.mxu0 %v4885_v53 }
 0x32b   : > { %4542 = vmatprep.subr.bf16.mxu1 %v4883_v52 }
 0x32d   : > { %4583 = vmatpush3.bf16.msra.mxu0 %v4886_v6 }
 0x32e   : > { %4543 = vmatpush3.bf16.msra.mxu1 %v4884_v5 }
 0x383   : > { %v2835_v0 = vpop.f32.mrb[32].mxu1 }
 0x384   : > { %v4652_v10 = vadd.f32 %v2835_v0, %v5825_v48  ;;  %v2981_v11 = vpop.f32.mrb[40].mxu0  ;;  %v2837_v16 = vpop.f32.mrb[33].mxu1 }
 0x385   : > { %v4668_v19 = vadd.f32 %v2981_v11, %v5828_v46  ;;  %v4653_v21 = vadd.f32 %v2837_v16, %v5831_v18  ;;  %v2983_v13 = vpop.f32.mrb[41].mxu0  ;;  %v2839_v44 = vpop.f32.mrb[34].mxu1 }
 0x386   : > { %v4669_v20 = vadd.f32 %v2983_v13, %v5834_v50  ;;  %v4654_v24 = vadd.f32 %v2839_v44, %v5825_v48  ;;  %v2985_v17 = vpop.f32.mrb[42].mxu0  ;;  %v2841_v31 = vpop.f32.mrb[35].mxu1  ;;  %v3130_v36 = vmul.f32 %v4652_v10, %v5619_v4 }
 0x387   : > { %v4670_v49 = vadd.f32 %v2985_v17, %v5828_v46  ;;  %v4655_v32 = vadd.f32 %v2841_v31, %v5831_v18  ;;  %v2987_v35 = vpop.f32.mrb[43].mxu0  ;;  %v3132_v38 = vmul.f32 %v4668_v19, %v5619_v4  ;;  %v3131_v33 = vmul.f32 %v4653_v21, %v5619_v4 }
 0x388   : > { %v3138_v12 = vmul.f32 %v4654_v24, %v5622_v61  ;;  %v4671_v28 = vadd.f32 %v2987_v35, %v5834_v50  ;;  %v3133_v51 = vmul.f32 %v4669_v20, %v5619_v4 }
 0x389   : > { %v3140_v30 = vmul.f32 %v4670_v49, %v5622_v61  ;;  %v3139_v47 = vmul.f32 %v4655_v32, %v5622_v61 }
 0x38a   : > { %v3194_v40 = vpack.c.bf16 %v3138_v12, %v3130_v36  ;;  %v3141_v54 = vmul.f32 %v4671_v28, %v5622_v61 }
 0x38b   : > { %v3196_v14 = vpack.c.bf16 %v3140_v30, %v3132_v38  ;;  %v2845_v57 = vpop.f32.mrb[36].mxu1  ;;  %v3195_v58 = vpack.c.bf16 %v3139_v47, %v3131_v33 }
 0x38c   : > { %v4656_v29 = vadd.f32 %v2845_v57, %v5825_v48  ;;  %v2991_v55 = vpop.f32.mrb[44].mxu0  ;;  %v2847_v56 = vpop.f32.mrb[37].mxu1  ;;  %v3197_v62 = vpack.c.bf16 %v3141_v54, %v3133_v51 }
 0x38d   : > { %v4672_v37 = vadd.f32 %v2991_v55, %v5828_v46  ;;  %v4657_v41 = vadd.f32 %v2847_v56, %v5831_v18  ;;  %v2993_v22 = vpop.f32.mrb[45].mxu0  ;;  %v2849_v23 = vpop.f32.mrb[38].mxu1  ;;  %3896 = vmatprep.mubr.bf16.mxu1 %v3195_v58 }
 0x38e   : > { %v4673_v4 = vadd.f32 %v2993_v22, %v5834_v50  ;;  %v4658_v63 = vadd.f32 %v2849_v23, %v5825_v48  ;;  %v2995_v61 = vpop.f32.mrb[46].mxu0  ;;  %3961 = vmatprep.mubr.bf16.mxu0 %v3197_v62  ;;  %v2851_v1 = vpop.f32.mrb[39].mxu1  ;;  %3897 = vmatmul.mubr.bf16.vlgmr.msra.gmra.mrb[64].mxu1 %v3194_v40  ;;  %v3146_v26 = vmul.f32 %v4656_v29, %v5648_v39 }
 0x38f   : > { %v4674_v25 = vadd.f32 %v2995_v61, %v5828_v46  ;;  %v4659_v2 = vadd.f32 %v2851_v1, %v5831_v18  ;;  %v2997_v43 = vpop.f32.mrb[47].mxu0  ;;  %3962 = vmatmul.mubr.bf16.vlgmr.msra.gmra.mrb[72].mxu0 %v3196_v14  ;;  %v3148_v52 = vmul.f32 %v4672_v37, %v5648_v39  ;;  %v3147_v53 = vmul.f32 %v4657_v41, %v5648_v39 }
 0x390   : > { %v3154_v34 = vmul.f32 %v4658_v63, %v5660_v59  ;;  %v4675_v3 = vadd.f32 %v2997_v43, %v5834_v50  ;;  %v3149_v7 = vmul.f32 %v4673_v4, %v5648_v39 }
 0x391   : > { %v3156_v5 = vmul.f32 %v4674_v25, %v5660_v59  ;;  %v3155_v6 = vmul.f32 %v4659_v2, %v5660_v59 }
 0x392   : > { %v3157_v8 = vmul.f32 %v4675_v3, %v5660_v59  ;;  %v3202_v9 = vpack.c.bf16 %v3154_v34, %v3146_v26 }
 0x393   : > { %v2855_v45 = vpop.f32.mrb[40].mxu1  ;;  %v3203_v0 = vpack.c.bf16 %v3155_v6, %v3147_v53  ;;  %v3204_v10 = vpack.c.bf16 %v3156_v5, %v3148_v52 }
 0x394   : > { %v4660_v11 = vadd.f32 %v2855_v45, %v5825_v48  ;;  %v3001_v16 = vpop.f32.mrb[48].mxu0  ;;  %v2857_v19 = vpop.f32.mrb[41].mxu1  ;;  %v3205_v21 = vpack.c.bf16 %v3157_v8, %v3149_v7 }
 0x395   : > { %v4676_v13 = vadd.f32 %v3001_v16, %v5828_v46  ;;  %v4661_v44 = vadd.f32 %v2857_v19, %v5831_v18  ;;  %v3003_v20 = vpop.f32.mrb[49].mxu0  ;;  %v2859_v24 = vpop.f32.mrb[42].mxu1  ;;  %3904 = vmatprep.mubr.bf16.mxu1 %v3203_v0 }
 0x396   : > { %v4677_v39 = vadd.f32 %v3003_v20, %v5834_v50  ;;  %v4662_v59 = vadd.f32 %v2859_v24, %v5825_v48  ;;  %v3005_v17 = vpop.f32.mrb[50].mxu0  ;;  %3969 = vmatprep.mubr.bf16.mxu0 %v3205_v21  ;;  %v2861_v31 = vpop.f32.mrb[43].mxu1  ;;  %3905 = vmatmul.mubr.bf16.gmra.mrb[68].mxu1 %v3202_v9  ;;  %v3162_v36 = vmul.f32 %v4660_v11, %v5699_v42 }
 0x397   : > { %v4678_v49 = vadd.f32 %v3005_v17, %v5828_v46  ;;  %v4663_v32 = vadd.f32 %v2861_v31, %v5831_v18  ;;  %v3007_v35 = vpop.f32.mrb[51].mxu0  ;;  %3970 = vmatmul.mubr.bf16.gmra.mrb[76].mxu0 %v3204_v10  ;;  %v3164_v38 = vmul.f32 %v4676_v13, %v5699_v42  ;;  %v3163_v33 = vmul.f32 %v4661_v44, %v5699_v42 }
 0x398   : > { %v3170_v12 = vmul.f32 %v4662_v59, %v5711_v60  ;;  %v4679_v28 = vadd.f32 %v3007_v35, %v5834_v50  ;;  %v3165_v51 = vmul.f32 %v4677_v39, %v5699_v42 }
 0x399   : > { %v3172_v30 = vmul.f32 %v4678_v49, %v5711_v60  ;;  %v3171_v47 = vmul.f32 %v4663_v32, %v5711_v60 }
 0x39a   : > { %v3173_v40 = vmul.f32 %v4679_v28, %v5711_v60  ;;  %v3210_v54 = vpack.c.bf16 %v3170_v12, %v3162_v36 }
 0x39b   : > { %v2865_v14 = vpop.f32.mrb[44].mxu1  ;;  %v3211_v57 = vpack.c.bf16 %v3171_v47, %v3163_v33  ;;  %v3212_v58 = vpack.c.bf16 %v3172_v30, %v3164_v38 }
 0x39c   : > { %v4664_v29 = vadd.f32 %v2865_v14, %v5825_v48  ;;  %v3011_v55 = vpop.f32.mrb[52].mxu0  ;;  %v2867_v56 = vpop.f32.mrb[45].mxu1  ;;  %v3213_v62 = vpack.c.bf16 %v3173_v40, %v3165_v51 }
 0x39d   : > { %v4680_v37 = vadd.f32 %v3011_v55, %v5828_v46  ;;  %v4665_v41 = vadd.f32 %v2867_v56, %v5831_v18  ;;  %v3013_v22 = vpop.f32.mrb[53].mxu0  ;;  %v2869_v23 = vpop.f32.mrb[46].mxu1  ;;  %3912 = vmatprep.mubr.bf16.mxu1 %v3211_v57 }
 0x39e   : > { %v4681_v42 = vadd.f32 %v3013_v22, %v5834_v50  ;;  %v4666_v60 = vadd.f32 %v2869_v23, %v5825_v48  ;;  %v3015_v4 = vpop.f32.mrb[54].mxu0  ;;  %3977 = vmatprep.mubr.bf16.mxu0 %v3213_v62  ;;  %v2871_v63 = vpop.f32.mrb[47].mxu1  ;;  %3913 = vmatmul.mubr.bf16.gmra.mrb[72].mxu1 %v3210_v54  ;;  %v3178_v2 = vmul.f32 %v4664_v29, %v5747_v15 }
 0x39f   : > { %v4682_v61 = vadd.f32 %v3015_v4, %v5828_v46  ;;  %v4667_v1 = vadd.f32 %v2871_v63, %v5831_v18  ;;  %v3017_v25 = vpop.f32.mrb[55].mxu0  ;;  %3978 = vmatmul.mubr.bf16.gmra.mrb[80].mxu0 %v3212_v58  ;;  %v3180_v34 = vmul.f32 %v4680_v37, %v5747_v15  ;;  %v3179_v48 = vmul.f32 %v4665_v41, %v5747_v15 }
 0x3a0   : > { %v3186_v43 = vmul.f32 %v4666_v60, %v5758_v27  ;;  %v4683_v26 = vadd.f32 %v3017_v25, %v5834_v50  ;;  %v3181_v46 = vmul.f32 %v4681_v42, %v5747_v15 }
 0x3a1   : > { %v3188_v3 = vmul.f32 %v4682_v61, %v5758_v27  ;;  %v3187_v52 = vmul.f32 %v4667_v1, %v5758_v27 }
 0x3a2   : > { %v3189_v18 = vmul.f32 %v4683_v26, %v5758_v27  ;;  %v3218_v53 = vpack.c.bf16 %v3186_v43, %v3178_v2 }
 0x3a3   : > { %v3219_v5 = vpack.c.bf16 %v3187_v52, %v3179_v48  ;;  %v3220_v6 = vpack.c.bf16 %v3188_v3, %v3180_v34 }
 0x3a4   : > { %v3221_v7 = vpack.c.bf16 %v3189_v18, %v3181_v46 }
 0x3a5   : > { %3920 = vmatprep.mubr.bf16.mxu1 %v3219_v5 }
 0x3a6   : > { %3985 = vmatprep.mubr.bf16.mxu0 %v3221_v7  ;;  %3921 = vmatmul.mubr.bf16.gmra.mrb[76].mxu1 %v3218_v53 }
 0x3a7   : > { %3986 = vmatmul.mubr.bf16.gmra.mrb[84].mxu0 %v3220_v6 }
 0x3e0   : > { %v4464_v50 = vpop.f32.mrb[48].mxu1 }
 0x3e1   : > { %v4504_v8 = vpop.f32.mrb[56].mxu0  ;;  %v4465_v9 = vpop.f32.mrb[49].mxu1 }
 0x3e2   : > { %v4466_v45 = vadd.f32 %v4465_v9, %v4464_v50  ;;  %v4505_v0 = vpop.f32.mrb[57].mxu0  ;;  %v4467_v10 = vpop.f32.mrb[50].mxu1 }
 0x3e3   : > { %v4506_v11 = vadd.f32 %v4505_v0, %v4504_v8  ;;  %v4507_v16 = vpop.f32.mrb[58].mxu0  ;;  %v4468_v19 = vpop.f32.mrb[51].mxu1 }
 0x3e4   : > { %v4469_v15 = vadd.f32 %v4468_v19, %v4467_v10  ;;  %v4508_v21 = vpop.f32.mrb[59].mxu0 }
 0x3e5   : > { %v3834_v27 = vadd.f32 %v4506_v11, %v4466_v45  ;;  %v4509_v13 = vadd.f32 %v4508_v21, %v4507_v16 }
 0x3e7   : > { %v3837_v44 = vadd.f32 %v4509_v13, %v4469_v15 }
 0x3e8   : > { %v4470_v20 = vpop.f32.mrb[52].mxu1 }
 0x3e9   : > { %v4510_v24 = vpop.f32.mrb[60].mxu0  ;;  %v4471_v39 = vpop.f32.mrb[53].mxu1 }
 0x3ea   : > { %v4472_v59 = vadd.f32 %v4471_v39, %v4470_v20  ;;  %v4511_v17 = vpop.f32.mrb[61].mxu0  ;;  %v4473_v31 = vpop.f32.mrb[54].mxu1 }
 0x3eb   : > { %v4512_v49 = vadd.f32 %v4511_v17, %v4510_v24  ;;  %v4513_v32 = vpop.f32.mrb[62].mxu0  ;;  %v4474_v35 = vpop.f32.mrb[55].mxu1 }
 0x3ec   : > { %v4475_v36 = vadd.f32 %v4474_v35, %v4473_v31  ;;  %v4514_v12 = vpop.f32.mrb[63].mxu0 }
 0x3ed   : > { %v3842_v28 = vadd.f32 %v4512_v49, %v4472_v59  ;;  %v4515_v38 = vadd.f32 %v4514_v12, %v4513_v32 }
 0x3ef   : > { %v3845_v33 = vadd.f32 %v4515_v38, %v4475_v36 }
 0x3f0   : > { %v4476_v30 = vpop.f32.mrb[56].mxu1 }
 0x3f1   : > { %v4516_v47 = vpop.f32.mrb[64].mxu0  ;;  %v4477_v51 = vpop.f32.mrb[57].mxu1 }
 0x3f2   : > { %v4478_v40 = vadd.f32 %v4477_v51, %v4476_v30  ;;  %v4517_v54 = vpop.f32.mrb[65].mxu0  ;;  %v4479_v14 = vpop.f32.mrb[58].mxu1 }
 0x3f3   : > { %v4518_v57 = vadd.f32 %v4517_v54, %v4516_v47  ;;  %v4519_v58 = vpop.f32.mrb[66].mxu0  ;;  %v4480_v29 = vpop.f32.mrb[59].mxu1 }
 0x3f4   : > { %v4481_v55 = vadd.f32 %v4480_v29, %v4479_v14  ;;  %v4520_v56 = vpop.f32.mrb[67].mxu0 }
 0x3f5   : > { %v5900_v62 = vadd.f32 %v4518_v57, %v4478_v40  ;;  %v4521_v37 = vadd.f32 %v4520_v56, %v4519_v58 }
 0x3f7   : > { %v5902_v41 = vadd.f32 %v4521_v37, %v4481_v55 }
 0x3f8   : > { %v4482_v22 = vpop.f32.mrb[60].mxu1 }
 0x3f9   : > { %v4522_v23 = vpop.f32.mrb[68].mxu0  ;;  %v4483_v42 = vpop.f32.mrb[61].mxu1 }
 0x3fa   : > { %v4484_v60 = vadd.f32 %v4483_v42, %v4482_v22  ;;  %v4523_v4 = vpop.f32.mrb[69].mxu0  ;;  %v4485_v63 = vpop.f32.mrb[62].mxu1 }
 0x3fb   : > { %v4524_v61 = vadd.f32 %v4523_v4, %v4522_v23  ;;  %v4525_v1 = vpop.f32.mrb[70].mxu0  ;;  %v4486_v25 = vpop.f32.mrb[63].mxu1 }
 0x3fc   : > { %v4487_v2 = vadd.f32 %v4486_v25, %v4485_v63  ;;  %v4526_v43 = vpop.f32.mrb[71].mxu0 }
 0x3fd   : > { %v5904_v26 = vadd.f32 %v4524_v61, %v4484_v60  ;;  %v4527_v34 = vadd.f32 %v4526_v43, %v4525_v1 }
 0x3ff   : > { %v5906_v48 = vadd.f32 %v4527_v34, %v4487_v2 }
 0x461   : > { %v4544_v3 = vpop.f32.mrb[64].mxu1 }
 0x462   : > { %v4584_v52 = vpop.f32.mrb[72].mxu0  ;;  %v4545_v46 = vpop.f32.mrb[65].mxu1 }
 0x463   : > { %v4546_v18 = vadd.f32 %v4545_v46, %v4544_v3  ;;  %v4585_v53 = vpop.f32.mrb[73].mxu0  ;;  %v4547_v5 = vpop.f32.mrb[66].mxu1 }
 0x464   : > { %v4586_v6 = vadd.f32 %v4585_v53, %v4584_v52  ;;  %v4587_v7 = vpop.f32.mrb[74].mxu0  ;;  %v4548_v50 = vpop.f32.mrb[67].mxu1 }
 0x465   : > { %v3899_v8 = vadd.f32 %v4546_v18, %v3834_v27  ;;  %v4549_v9 = vadd.f32 %v4548_v50, %v4547_v5  ;;  %v4588_v45 = vpop.f32.mrb[75].mxu0 }
 0x466   : > { %v4589_v0 = vadd.f32 %v4588_v45, %v4587_v7 }
 0x467   : > { %v3964_v10 = vadd.f32 %v4586_v6, %v3899_v8  ;;  %v3902_v11 = vadd.f32 %v4549_v9, %v3837_v44 }
 0x469   : > { %3994 = vst.msk [vmem:[%s5913_s30] sm:$0xff] %vm360_vm0, %v3964_v10  ;;  %v3967_v16 = vadd.f32 %v4589_v0, %v3902_v11  ;;  %v4550_v19 = vpop.f32.mrb[68].mxu1 }
 0x46a   : > { %v4590_v15 = vpop.f32.mrb[76].mxu0  ;;  %v4551_v21 = vpop.f32.mrb[69].mxu1 }
 0x46b   : > { %3995 = vst.msk [vmem:[%s5913_s30 + $0x8] sm:$0xff] %vm360_vm0, %v3967_v16  ;;  %v4552_v27 = vadd.f32 %v4551_v21, %v4550_v19  ;;  %v4591_v13 = vpop.f32.mrb[77].mxu0  ;;  %v4553_v20 = vpop.f32.mrb[70].mxu1 }
 0x46c   : > { %v4592_v24 = vadd.f32 %v4591_v13, %v4590_v15  ;;  %v4593_v39 = vpop.f32.mrb[78].mxu0  ;;  %v4554_v59 = vpop.f32.mrb[71].mxu1 }
 0x46d   : > { %v3907_v17 = vadd.f32 %v4552_v27, %v3842_v28  ;;  %v4555_v31 = vadd.f32 %v4554_v59, %v4553_v20  ;;  %v4594_v49 = vpop.f32.mrb[79].mxu0 }
 0x46e   : > { %v4595_v44 = vadd.f32 %v4594_v49, %v4593_v39 }
 0x46f   : > { %v3972_v32 = vadd.f32 %v4592_v24, %v3907_v17  ;;  %v3910_v35 = vadd.f32 %v4555_v31, %v3845_v33 }
 0x471   : > { %3996 = vst.msk [vmem:[%s5913_s30 + $0x10] sm:$0xff] %vm360_vm0, %v3972_v32  ;;  %v3975_v36 = vadd.f32 %v4595_v44, %v3910_v35  ;;  %v4556_v12 = vpop.f32.mrb[72].mxu1 }
 0x472   : > { %v4596_v38 = vpop.f32.mrb[80].mxu0  ;;  %v4557_v30 = vpop.f32.mrb[73].mxu1 }
 0x473   : > { %3997 = vst.msk [vmem:[%s5913_s30 + $0x18] sm:$0xff] %vm360_vm0, %v3975_v36  ;;  %v4558_v47 = vadd.f32 %v4557_v30, %v4556_v12  ;;  %v4597_v51 = vpop.f32.mrb[81].mxu0  ;;  %v4559_v40 = vpop.f32.mrb[74].mxu1 }
 0x474   : > { %v4598_v54 = vadd.f32 %v4597_v51, %v4596_v38  ;;  %v4599_v28 = vpop.f32.mrb[82].mxu0  ;;  %v4560_v14 = vpop.f32.mrb[75].mxu1 }
 0x475   : > { %v3915_v57 = vadd.f32 %v4558_v47, %v5900_v62  ;;  %v4561_v58 = vadd.f32 %v4560_v14, %v4559_v40  ;;  %v4600_v33 = vpop.f32.mrb[83].mxu0 }
 0x476   : > { %v4601_v29 = vadd.f32 %v4600_v33, %v4599_v28 }
 0x477   : > { %v3980_v55 = vadd.f32 %v4598_v54, %v3915_v57  ;;  %v3918_v56 = vadd.f32 %v4561_v58, %v5902_v41 }
 0x479   : > { %3998 = vst.msk [vmem:[%s5913_s30 + $0x20] sm:$0xff] %vm360_vm0, %v3980_v55  ;;  %v3983_v37 = vadd.f32 %v4601_v29, %v3918_v56  ;;  %v4562_v22 = vpop.f32.mrb[76].mxu1 }
 0x47a   : > { %v4602_v23 = vpop.f32.mrb[84].mxu0  ;;  %v4563_v42 = vpop.f32.mrb[77].mxu1 }
 0x47b   : > { %3999 = vst.msk [vmem:[%s5913_s30 + $0x28] sm:$0xff] %vm360_vm0, %v3983_v37  ;;  %v4564_v60 = vadd.f32 %v4563_v42, %v4562_v22  ;;  %v4603_v4 = vpop.f32.mrb[85].mxu0  ;;  %v4565_v63 = vpop.f32.mrb[78].mxu1 }
 0x47c   : > { %v4604_v62 = vadd.f32 %v4603_v4, %v4602_v23  ;;  %v4605_v61 = vpop.f32.mrb[86].mxu0  ;;  %v4566_v1 = vpop.f32.mrb[79].mxu1 }
 0x47d   : > { %v3923_v25 = vadd.f32 %v4564_v60, %v5904_v26  ;;  %v4567_v2 = vadd.f32 %v4566_v1, %v4565_v63  ;;  %v4606_v41 = vpop.f32.mrb[87].mxu0 }
 0x47e   : > { %v4607_v43 = vadd.f32 %v4606_v41, %v4605_v61 }
 0x47f   : > { %v3988_v34 = vadd.f32 %v4604_v62, %v3923_v25  ;;  %v3926_v3 = vadd.f32 %v4567_v2, %v5906_v48 }
 0x481   : > { %4000 = vst.msk [vmem:[%s5913_s30 + $0x30] sm:$0xff] %vm360_vm0, %v3988_v34  ;;  %v3991_v52 = vadd.f32 %v4607_v43, %v3926_v3 }
 0x483   : > { %4001 = vst.msk [vmem:[%s5913_s30 + $0x38] sm:$0xff] %vm360_vm0, %v3991_v52 }
 0x484 PF: > { %s19_s27 = sadd.s32 1, %s4941_s27  }
 0x485   : > { %p16_p3 = scmp.ge.s32.totalorder %s19_s27, 4  }
 0x487   :  { %18 = sbr.rel (!%p16_p3) target bundleno = 1 (0x1), region = 87 }
 0x48e   :  { %4024 = vsyncpa [#allocation3], 1 }
 0x48f   :  { %4026 = vsyncpa [#allocation3 + $0x1], 1 }

</bundles_post_ra>
